<compile_context>
chip_gen: v7x
topology: tpu7x:2x2x1
jax: 0.10.0
libtpu: 0.0.40
codegen_flags: <defaults>
</compile_context>

<pallas_src>
import functools

import jax
import jax.numpy as jnp
from jax import lax
from jax.experimental import pallas as pl
from jax.experimental.pallas import tpu as pltpu

# ---------------- config (small synthetic shapes) ----------------
VOCAB = 100
TYPE_VOCAB = 2
MAX_POS = 16
HIDDEN = 32
N_HEADS = 4
HEAD_DIM = HIDDEN // N_HEADS
INTER = 64
N_LAYERS = 2
N_LABELS = 6          # len(Constants.OUTPUT_LABELS)
LN_EPS = 1e-12
LOGIT_PAD = 128       # lane-dense padded width for the logits store

# Whole-array-in-VMEM spec (total footprint ~100 KB; no grid tiling needed at these shapes).
VMEM_SPEC = pl.BlockSpec(memory_space=pltpu.MemorySpace.VMEM)


# ---------------- in-kernel helpers (f32 element-wise math) ----------------
def _layer_norm(x, g, b):
    mu = jnp.mean(x, axis=-1, keepdims=True)
    xc = x - mu
    var = jnp.mean(xc * xc, axis=-1, keepdims=True)
    return xc * lax.rsqrt(var + LN_EPS) * g + b


def _gelu(x):
    # tanh-approx GELU (HF default is exact erf GELU; small numeric drift).
    c = 0.7978845608028654  # sqrt(2/pi)
    return 0.5 * x * (1.0 + jnp.tanh(c * (x + 0.044715 * x * x * x)))


# ---------------- the fused model kernel ----------------
def _model_kernel(emb_ref, mask_ref,
                  emb_ln_g_ref, emb_ln_b_ref,
                  wqkv_ref, bqkv_ref, wo_ref, bo_ref,
                  ln1_g_ref, ln1_b_ref,
                  w1_ref, b1_ref, w2_ref, b2_ref,
                  ln2_g_ref, ln2_b_ref,
                  pool_w_ref, pool_b_ref,
                  cls_w_ref, cls_b_ref,
                  out_ref, *, batch, seq):
    scale = 1.0 / float(HEAD_DIM) ** 0.5

    # Embedding LayerNorm (no zeros residual).
    h = _layer_norm(emb_ref[...], emb_ln_g_ref[...], emb_ln_b_ref[...])   # (B*S, H) f32
    mask = mask_ref[...]                                                  # (B, 1, S) additive

    def layer_body(l, h):
        # ---- fused QKV projection: one MXU pass over the (B*S, H) slab ----
        qkv = jnp.dot(h.astype(jnp.bfloat16), wqkv_ref[l],
                      preferred_element_type=jnp.float32) + bqkv_ref[l]   # (B*S, 3H)
        qkv3 = qkv.reshape(batch, seq, 3 * HIDDEN)

        # ---- per-head attention; heads are static lane slices of the VMEM-resident slab ----
        ctx_heads = []
        for hh in range(N_HEADS):
            q = qkv3[:, :, hh * HEAD_DIM:(hh + 1) * HEAD_DIM]                       # (B,S,Dh)
            k = qkv3[:, :, HIDDEN + hh * HEAD_DIM:HIDDEN + (hh + 1) * HEAD_DIM]
            v = qkv3[:, :, 2 * HIDDEN + hh * HEAD_DIM:2 * HIDDEN + (hh + 1) * HEAD_DIM]
            s = jnp.einsum("bqd,bkd->bqk", q, k,
                           preferred_element_type=jnp.float32) * scale + mask       # (B,S,S)
            s = s - jnp.max(s, axis=-1, keepdims=True)
            p = jnp.exp(s)
            p = p * pl.reciprocal(jnp.sum(p, axis=-1, keepdims=True), approx=True)
            ctx_heads.append(jnp.einsum("bqk,bkd->bqd", p, v,
                                        preferred_element_type=jnp.float32))        # (B,S,Dh)
        ctx = jnp.concatenate(ctx_heads, axis=-1).reshape(batch * seq, HIDDEN)

        # ---- attention output projection + add&norm ----
        attn_out = jnp.dot(ctx.astype(jnp.bfloat16), wo_ref[l],
                           preferred_element_type=jnp.float32) + bo_ref[l]
        h = _layer_norm(attn_out + h, ln1_g_ref[l], ln1_b_ref[l])

        # ---- FFN (GELU) + add&norm ----
        ff = jnp.dot(h.astype(jnp.bfloat16), w1_ref[l],
                     preferred_element_type=jnp.float32) + b1_ref[l]
        ff = _gelu(ff)
        ff = jnp.dot(ff.astype(jnp.bfloat16), w2_ref[l],
                     preferred_element_type=jnp.float32) + b2_ref[l]
        h = _layer_norm(ff + h, ln2_g_ref[l], ln2_b_ref[l])
        return h

    h = lax.fori_loop(0, N_LAYERS, layer_body, h)

    # ---- pooler on [CLS] rows + classifier, fused; lane-dense padded logits store ----
    cls = h.reshape(batch, seq, HIDDEN)[:, 0, :]                                     # (B, H)
    pooled = jnp.tanh(jnp.dot(cls.astype(jnp.bfloat16), pool_w_ref[...],
                              preferred_element_type=jnp.float32) + pool_b_ref[...])
    # Dropout(p=0.3): identity in eval/inference mode.
    # TODO(synk): training-mode stochastic dropout masking omitted (inference semantics).
    logits = jnp.dot(pooled.astype(jnp.bfloat16), cls_w_ref[...],
                     preferred_element_type=jnp.float32) + cls_b_ref[...]            # (B, 128)
    out_ref[...] = logits


# ---------------- deterministic parameter init (stacked per-layer weights) ----------------
def init_params(key):
    def nrm(k, shape):
        return 0.02 * jax.random.normal(k, shape, dtype=jnp.float32)

    ks = jax.random.split(key, 5)
    p = {
        "word_emb": nrm(ks[0], (VOCAB, HIDDEN)),
        "pos_emb": nrm(ks[1], (MAX_POS, HIDDEN)),
        "type_emb": nrm(ks[2], (TYPE_VOCAB, HIDDEN)),
        "emb_ln_g": jnp.ones((1, HIDDEN), jnp.float32),
        "emb_ln_b": jnp.zeros((1, HIDDEN), jnp.float32),
        "pool_w": nrm(ks[3], (HIDDEN, HIDDEN)).astype(jnp.bfloat16),
        "pool_b": jnp.zeros((1, HIDDEN), jnp.float32),
    }
    # Classifier weight padded to a lane-dense (H, 128) slab (extra columns are zero).
    cls_w = nrm(ks[4], (HIDDEN, N_LABELS))
    p["cls_w"] = (jnp.zeros((HIDDEN, LOGIT_PAD), jnp.float32)
                  .at[:, :N_LABELS].set(cls_w).astype(jnp.bfloat16))
    p["cls_b"] = jnp.zeros((1, LOGIT_PAD), jnp.float32)

    wqkv, wo, w1, w2 = [], [], [], []
    for i in range(N_LAYERS):
        lk = jax.random.split(jax.random.fold_in(key, 100 + i), 6)
        wqkv.append(jnp.concatenate([nrm(lk[0], (HIDDEN, HIDDEN)),
                                     nrm(lk[1], (HIDDEN, HIDDEN)),
                                     nrm(lk[2], (HIDDEN, HIDDEN))], axis=1))   # (H, 3H)
        wo.append(nrm(lk[3], (HIDDEN, HIDDEN)))
        w1.append(nrm(lk[4], (HIDDEN, INTER)))
        w2.append(nrm(lk[5], (INTER, HIDDEN)))
    p["wqkv"] = jnp.stack(wqkv).astype(jnp.bfloat16)                 # (L, H, 3H)
    p["bqkv"] = jnp.zeros((N_LAYERS, 1, 3 * HIDDEN), jnp.float32)
    p["wo"] = jnp.stack(wo).astype(jnp.bfloat16)                     # (L, H, H)
    p["bo"] = jnp.zeros((N_LAYERS, 1, HIDDEN), jnp.float32)
    p["w1"] = jnp.stack(w1).astype(jnp.bfloat16)                     # (L, H, I)
    p["b1"] = jnp.zeros((N_LAYERS, 1, INTER), jnp.float32)
    p["w2"] = jnp.stack(w2).astype(jnp.bfloat16)                     # (L, I, H)
    p["b2"] = jnp.zeros((N_LAYERS, 1, HIDDEN), jnp.float32)
    p["ln1_g"] = jnp.ones((N_LAYERS, 1, HIDDEN), jnp.float32)
    p["ln1_b"] = jnp.zeros((N_LAYERS, 1, HIDDEN), jnp.float32)
    p["ln2_g"] = jnp.ones((N_LAYERS, 1, HIDDEN), jnp.float32)
    p["ln2_b"] = jnp.zeros((N_LAYERS, 1, HIDDEN), jnp.float32)
    return p


# ---------------- forward pass (one pallas_call) ----------------
@jax.jit
def pragtag_forward(params, input_ids, attention_mask, token_type_ids):
    B, S = input_ids.shape
    assert S <= MAX_POS, f"sequence length {S} exceeds MAX_POS={MAX_POS}"

    # Embedding gather (glue: plain JAX), flattened to the (B*S, H) slab fed to the kernel.
    emb = (params["word_emb"][input_ids]
           + params["pos_emb"][jnp.arange(S)][None, :, :]
           + params["type_emb"][token_type_ids]).reshape(B * S, HIDDEN)

    # Additive attention mask, (B, 1, S); broadcast per head inside the kernel.
    add_mask = ((1.0 - attention_mask.astype(jnp.float32)) * -1e9)[:, None, :]

    kernel = functools.partial(_model_kernel, batch=B, seq=S)
    logits_padded = pl.pallas_call(
        kernel,
        out_shape=jax.ShapeDtypeStruct((B, LOGIT_PAD), jnp.float32),
        in_specs=[VMEM_SPEC] * 20,
        out_specs=VMEM_SPEC,
    )(emb, add_mask,
      params["emb_ln_g"], params["emb_ln_b"],
      params["wqkv"], params["bqkv"], params["wo"], params["bo"],
      params["ln1_g"], params["ln1_b"],
      params["w1"], params["b1"], params["w2"], params["b2"],
      params["ln2_g"], params["ln2_b"],
      params["pool_w"], params["pool_b"],
      params["cls_w"], params["cls_b"])

    return logits_padded[:, :N_LABELS]


if __name__ == "__main__":
    key = jax.random.PRNGKey(0)
    pkey, ikey = jax.random.split(key)
    params = init_params(pkey)

    B, S = 2, 8
    input_ids = jax.random.randint(ikey, (B, S), 0, VOCAB, dtype=jnp.int32)
    attention_mask = jnp.ones((B, S), dtype=jnp.int32).at[1, 6:].set(0)
    token_type_ids = jnp.zeros((B, S), dtype=jnp.int32)

    logits = pragtag_forward(params, input_ids, attention_mask, token_type_ids)
    jax.block_until_ready(logits)
    assert logits.shape == (B, N_LABELS) and logits.dtype == jnp.float32
    assert bool(jnp.all(jnp.isfinite(logits)))
    print("KERNEL_OK")
</pallas_src>

<mosaic_0001>
module attributes {stable_mosaic.version = 11 : i64} {
  func.func @_model_kernel(%arg0: memref<16x32xf32, #tpu.memory_space<vmem>>, %arg1: memref<2x1x8xf32, #tpu.memory_space<vmem>>, %arg2: memref<1x32xf32, #tpu.memory_space<vmem>>, %arg3: memref<1x32xf32, #tpu.memory_space<vmem>>, %arg4: memref<2x32x96xbf16, #tpu.memory_space<vmem>>, %arg5: memref<2x1x96xf32, #tpu.memory_space<vmem>>, %arg6: memref<2x32x32xbf16, #tpu.memory_space<vmem>>, %arg7: memref<2x1x32xf32, #tpu.memory_space<vmem>>, %arg8: memref<2x1x32xf32, #tpu.memory_space<vmem>>, %arg9: memref<2x1x32xf32, #tpu.memory_space<vmem>>, %arg10: memref<2x32x64xbf16, #tpu.memory_space<vmem>>, %arg11: memref<2x1x64xf32, #tpu.memory_space<vmem>>, %arg12: memref<2x64x32xbf16, #tpu.memory_space<vmem>>, %arg13: memref<2x1x32xf32, #tpu.memory_space<vmem>>, %arg14: memref<2x1x32xf32, #tpu.memory_space<vmem>>, %arg15: memref<2x1x32xf32, #tpu.memory_space<vmem>>, %arg16: memref<32x32xbf16, #tpu.memory_space<vmem>>, %arg17: memref<1x32xf32, #tpu.memory_space<vmem>>, %arg18: memref<32x128xbf16, #tpu.memory_space<vmem>>, %arg19: memref<1x128xf32, #tpu.memory_space<vmem>>, %arg20: memref<2x128xf32, #tpu.memory_space<vmem>>) attributes {dimension_semantics = [], scalar_prefetch = 0 : i64, scratch_operands = 0 : i64, tpu.core_type = #tpu.core_type<tc>} {
    %c0 = arith.constant 0 : index
    %c0_0 = arith.constant 0 : index
    %0 = vector.load %arg0[%c0, %c0_0] : memref<16x32xf32, #tpu.memory_space<vmem>>, vector<16x32xf32>
    %c0_1 = arith.constant 0 : index
    %c0_2 = arith.constant 0 : index
    %1 = vector.load %arg2[%c0_1, %c0_2] : memref<1x32xf32, #tpu.memory_space<vmem>>, vector<1x32xf32>
    %c0_3 = arith.constant 0 : index
    %c0_4 = arith.constant 0 : index
    %2 = vector.load %arg3[%c0_3, %c0_4] : memref<1x32xf32, #tpu.memory_space<vmem>>, vector<1x32xf32>
    %cst = arith.constant dense<0.000000e+00> : vector<16xf32>
    %3 = vector.multi_reduction <add>, %0, %cst [1] : vector<16x32xf32> to vector<16xf32>
    %4 = vector.shape_cast %3 : vector<16xf32> to vector<16x1xf32>
    %cst_5 = arith.constant 3.200000e+01 : f32
    %5 = vector.broadcast %cst_5 : f32 to vector<16x1xf32>
    %6 = arith.divf %4, %5 : vector<16x1xf32>
    %7 = vector.broadcast %6 : vector<16x1xf32> to vector<16x32xf32>
    %8 = arith.subf %0, %7 : vector<16x32xf32>
    %9 = arith.mulf %8, %8 : vector<16x32xf32>
    %cst_6 = arith.constant dense<0.000000e+00> : vector<16xf32>
    %10 = vector.multi_reduction <add>, %9, %cst_6 [1] : vector<16x32xf32> to vector<16xf32>
    %11 = vector.shape_cast %10 : vector<16xf32> to vector<16x1xf32>
    %cst_7 = arith.constant 3.200000e+01 : f32
    %12 = vector.broadcast %cst_7 : f32 to vector<16x1xf32>
    %13 = arith.divf %11, %12 : vector<16x1xf32>
    %cst_8 = arith.constant 9.99999996E-13 : f32
    %14 = vector.broadcast %cst_8 : f32 to vector<16x1xf32>
    %15 = arith.addf %13, %14 : vector<16x1xf32>
    %16 = math.rsqrt %15 : vector<16x1xf32>
    %17 = vector.broadcast %16 : vector<16x1xf32> to vector<16x32xf32>
    %18 = arith.mulf %8, %17 : vector<16x32xf32>
    %19 = vector.broadcast %1 : vector<1x32xf32> to vector<16x32xf32>
    %20 = arith.mulf %18, %19 : vector<16x32xf32>
    %21 = vector.broadcast %2 : vector<1x32xf32> to vector<16x32xf32>
    %22 = arith.addf %20, %21 : vector<16x32xf32>
    %c0_9 = arith.constant 0 : index
    %c0_10 = arith.constant 0 : index
    %c0_11 = arith.constant 0 : index
    %23 = vector.load %arg1[%c0_9, %c0_10, %c0_11] : memref<2x1x8xf32, #tpu.memory_space<vmem>>, vector<2x1x8xf32>
    %c0_i32 = arith.constant 0 : i32
    %c2_i32 = arith.constant 2 : i32
    %24 = arith.addi %c0_i32, %c2_i32 : i32
    %c1_i32 = arith.constant 1 : i32
    %25 = scf.for %arg21 = %c0_i32 to %24 step %c1_i32 iter_args(%arg22 = %22) -> (vector<16x32xf32>)  : i32 {
      %43 = arith.truncf %arg22 : vector<16x32xf32> to vector<16x32xbf16>
      %44 = arith.index_cast %arg21 : i32 to index
      %c0_25 = arith.constant 0 : index
      %c0_26 = arith.constant 0 : index
      %45 = vector.load %arg4[%44, %c0_25, %c0_26] : memref<2x32x96xbf16, #tpu.memory_space<vmem>>, vector<1x32x96xbf16>
      %46 = vector.shape_cast %45 : vector<1x32x96xbf16> to vector<32x96xbf16>
      %cst_27 = arith.constant dense<0.000000e+00> : vector<16x96xf32>
      %47 = tpu.matmul %43, %46, %cst_27 {dimension_numbers = #tpu.dot_dimension_numbers<[1], [0], [0], [1], [0, 0, 1, 1], [], []>} : vector<16x32xbf16>, vector<32x96xbf16>, vector<16x96xf32> -> vector<16x96xf32>
      %48 = arith.index_cast %arg21 : i32 to index
      %c0_28 = arith.constant 0 : index
      %c0_29 = arith.constant 0 : index
      %49 = vector.load %arg5[%48, %c0_28, %c0_29] : memref<2x1x96xf32, #tpu.memory_space<vmem>>, vector<1x1x96xf32>
      %50 = vector.shape_cast %49 : vector<1x1x96xf32> to vector<1x96xf32>
      %51 = vector.broadcast %50 : vector<1x96xf32> to vector<16x96xf32>
      %52 = arith.addf %47, %51 : vector<16x96xf32>
      %53 = vector.shape_cast %52 : vector<16x96xf32> to vector<2x8x96xf32>
      %54 = vector.extract_strided_slice %53 {offsets = [0, 0, 0], sizes = [2, 8, 8], strides = [1, 1, 1]} : vector<2x8x96xf32> to vector<2x8x8xf32>
      %55 = vector.extract_strided_slice %53 {offsets = [0, 0, 32], sizes = [2, 8, 8], strides = [1, 1, 1]} : vector<2x8x96xf32> to vector<2x8x8xf32>
      %56 = vector.extract_strided_slice %53 {offsets = [0, 0, 64], sizes = [2, 8, 8], strides = [1, 1, 1]} : vector<2x8x96xf32> to vector<2x8x8xf32>
      "tpu.trace_start"() <{level = 10 : i32, message = "bqd,bkd->bqk"}> : () -> ()
      %cst_30 = arith.constant dense<0.000000e+00> : vector<2x8x8xf32>
      %57 = tpu.matmul %54, %55, %cst_30 {dimension_numbers = #tpu.dot_dimension_numbers<[2], [2], [1], [1], [0, 0, 0, 1, 1, 1], [0], [0]>} : vector<2x8x8xf32>, vector<2x8x8xf32>, vector<2x8x8xf32> -> vector<2x8x8xf32>
      "tpu.trace_stop"() : () -> ()
      %cst_31 = arith.constant 0.353553385 : f32
      %58 = vector.broadcast %cst_31 : f32 to vector<2x8x8xf32>
      %59 = arith.mulf %57, %58 : vector<2x8x8xf32>
      %60 = vector.broadcast %23 : vector<2x1x8xf32> to vector<2x8x8xf32>
      %61 = arith.addf %59, %60 : vector<2x8x8xf32>
      %cst_32 = arith.constant dense<0xFF800000> : vector<2x8xf32>
      %62 = vector.multi_reduction <maximumf>, %61, %cst_32 [2] : vector<2x8x8xf32> to vector<2x8xf32>
      %63 = vector.shape_cast %62 : vector<2x8xf32> to vector<2x8x1xf32>
      %64 = vector.broadcast %63 : vector<2x8x1xf32> to vector<2x8x8xf32>
      %65 = arith.subf %61, %64 : vector<2x8x8xf32>
      %66 = math.exp %65 : vector<2x8x8xf32>
      %cst_33 = arith.constant dense<0.000000e+00> : vector<2x8xf32>
      %67 = vector.multi_reduction <add>, %66, %cst_33 [2] : vector<2x8x8xf32> to vector<2x8xf32>
      %68 = vector.shape_cast %67 : vector<2x8xf32> to vector<2x8x1xf32>
      %69 = tpu.reciprocal %68 {approx = true} : vector<2x8x1xf32> -> vector<2x8x1xf32>
      %70 = vector.broadcast %69 : vector<2x8x1xf32> to vector<2x8x8xf32>
      %71 = arith.mulf %66, %70 : vector<2x8x8xf32>
      "tpu.trace_start"() <{level = 10 : i32, message = "bqk,bkd->bqd"}> : () -> ()
      %cst_34 = arith.constant dense<0.000000e+00> : vector<2x8x8xf32>
      %72 = tpu.matmul %71, %56, %cst_34 {dimension_numbers = #tpu.dot_dimension_numbers<[2], [1], [1], [2], [0, 0, 0, 1, 1, 2], [0], [0]>} : vector<2x8x8xf32>, vector<2x8x8xf32>, vector<2x8x8xf32> -> vector<2x8x8xf32>
      "tpu.trace_stop"() : () -> ()
      %73 = vector.extract_strided_slice %53 {offsets = [0, 0, 8], sizes = [2, 8, 8], strides = [1, 1, 1]} : vector<2x8x96xf32> to vector<2x8x8xf32>
      %74 = vector.extract_strided_slice %53 {offsets = [0, 0, 40], sizes = [2, 8, 8], strides = [1, 1, 1]} : vector<2x8x96xf32> to vector<2x8x8xf32>
      %75 = vector.extract_strided_slice %53 {offsets = [0, 0, 72], sizes = [2, 8, 8], strides = [1, 1, 1]} : vector<2x8x96xf32> to vector<2x8x8xf32>
      "tpu.trace_start"() <{level = 10 : i32, message = "bqd,bkd->bqk"}> : () -> ()
      %cst_35 = arith.constant dense<0.000000e+00> : vector<2x8x8xf32>
      %76 = tpu.matmul %73, %74, %cst_35 {dimension_numbers = #tpu.dot_dimension_numbers<[2], [2], [1], [1], [0, 0, 0, 1, 1, 1], [0], [0]>} : vector<2x8x8xf32>, vector<2x8x8xf32>, vector<2x8x8xf32> -> vector<2x8x8xf32>
      "tpu.trace_stop"() : () -> ()
      %cst_36 = arith.constant 0.353553385 : f32
      %77 = vector.broadcast %cst_36 : f32 to vector<2x8x8xf32>
      %78 = arith.mulf %76, %77 : vector<2x8x8xf32>
      %79 = vector.broadcast %23 : vector<2x1x8xf32> to vector<2x8x8xf32>
      %80 = arith.addf %78, %79 : vector<2x8x8xf32>
      %cst_37 = arith.constant dense<0xFF800000> : vector<2x8xf32>
      %81 = vector.multi_reduction <maximumf>, %80, %cst_37 [2] : vector<2x8x8xf32> to vector<2x8xf32>
      %82 = vector.shape_cast %81 : vector<2x8xf32> to vector<2x8x1xf32>
      %83 = vector.broadcast %82 : vector<2x8x1xf32> to vector<2x8x8xf32>
      %84 = arith.subf %80, %83 : vector<2x8x8xf32>
      %85 = math.exp %84 : vector<2x8x8xf32>
      %cst_38 = arith.constant dense<0.000000e+00> : vector<2x8xf32>
      %86 = vector.multi_reduction <add>, %85, %cst_38 [2] : vector<2x8x8xf32> to vector<2x8xf32>
      %87 = vector.shape_cast %86 : vector<2x8xf32> to vector<2x8x1xf32>
      %88 = tpu.reciprocal %87 {approx = true} : vector<2x8x1xf32> -> vector<2x8x1xf32>
      %89 = vector.broadcast %88 : vector<2x8x1xf32> to vector<2x8x8xf32>
      %90 = arith.mulf %85, %89 : vector<2x8x8xf32>
      "tpu.trace_start"() <{level = 10 : i32, message = "bqk,bkd->bqd"}> : () -> ()
      %cst_39 = arith.constant dense<0.000000e+00> : vector<2x8x8xf32>
      %91 = tpu.matmul %90, %75, %cst_39 {dimension_numbers = #tpu.dot_dimension_numbers<[2], [1], [1], [2], [0, 0, 0, 1, 1, 2], [0], [0]>} : vector<2x8x8xf32>, vector<2x8x8xf32>, vector<2x8x8xf32> -> vector<2x8x8xf32>
      "tpu.trace_stop"() : () -> ()
      %92 = vector.extract_strided_slice %53 {offsets = [0, 0, 16], sizes = [2, 8, 8], strides = [1, 1, 1]} : vector<2x8x96xf32> to vector<2x8x8xf32>
      %93 = vector.extract_strided_slice %53 {offsets = [0, 0, 48], sizes = [2, 8, 8], strides = [1, 1, 1]} : vector<2x8x96xf32> to vector<2x8x8xf32>
      %94 = vector.extract_strided_slice %53 {offsets = [0, 0, 80], sizes = [2, 8, 8], strides = [1, 1, 1]} : vector<2x8x96xf32> to vector<2x8x8xf32>
      "tpu.trace_start"() <{level = 10 : i32, message = "bqd,bkd->bqk"}> : () -> ()
      %cst_40 = arith.constant dense<0.000000e+00> : vector<2x8x8xf32>
      %95 = tpu.matmul %92, %93, %cst_40 {dimension_numbers = #tpu.dot_dimension_numbers<[2], [2], [1], [1], [0, 0, 0, 1, 1, 1], [0], [0]>} : vector<2x8x8xf32>, vector<2x8x8xf32>, vector<2x8x8xf32> -> vector<2x8x8xf32>
      "tpu.trace_stop"() : () -> ()
      %cst_41 = arith.constant 0.353553385 : f32
      %96 = vector.broadcast %cst_41 : f32 to vector<2x8x8xf32>
      %97 = arith.mulf %95, %96 : vector<2x8x8xf32>
      %98 = vector.broadcast %23 : vector<2x1x8xf32> to vector<2x8x8xf32>
      %99 = arith.addf %97, %98 : vector<2x8x8xf32>
      %cst_42 = arith.constant dense<0xFF800000> : vector<2x8xf32>
      %100 = vector.multi_reduction <maximumf>, %99, %cst_42 [2] : vector<2x8x8xf32> to vector<2x8xf32>
      %101 = vector.shape_cast %100 : vector<2x8xf32> to vector<2x8x1xf32>
      %102 = vector.broadcast %101 : vector<2x8x1xf32> to vector<2x8x8xf32>
      %103 = arith.subf %99, %102 : vector<2x8x8xf32>
      %104 = math.exp %103 : vector<2x8x8xf32>
      %cst_43 = arith.constant dense<0.000000e+00> : vector<2x8xf32>
      %105 = vector.multi_reduction <add>, %104, %cst_43 [2] : vector<2x8x8xf32> to vector<2x8xf32>
      %106 = vector.shape_cast %105 : vector<2x8xf32> to vector<2x8x1xf32>
      %107 = tpu.reciprocal %106 {approx = true} : vector<2x8x1xf32> -> vector<2x8x1xf32>
      %108 = vector.broadcast %107 : vector<2x8x1xf32> to vector<2x8x8xf32>
      %109 = arith.mulf %104, %108 : vector<2x8x8xf32>
      "tpu.trace_start"() <{level = 10 : i32, message = "bqk,bkd->bqd"}> : () -> ()
      %cst_44 = arith.constant dense<0.000000e+00> : vector<2x8x8xf32>
      %110 = tpu.matmul %109, %94, %cst_44 {dimension_numbers = #tpu.dot_dimension_numbers<[2], [1], [1], [2], [0, 0, 0, 1, 1, 2], [0], [0]>} : vector<2x8x8xf32>, vector<2x8x8xf32>, vector<2x8x8xf32> -> vector<2x8x8xf32>
      "tpu.trace_stop"() : () -> ()
      %111 = vector.extract_strided_slice %53 {offsets = [0, 0, 24], sizes = [2, 8, 8], strides = [1, 1, 1]} : vector<2x8x96xf32> to vector<2x8x8xf32>
      %112 = vector.extract_strided_slice %53 {offsets = [0, 0, 56], sizes = [2, 8, 8], strides = [1, 1, 1]} : vector<2x8x96xf32> to vector<2x8x8xf32>
      %113 = vector.extract_strided_slice %53 {offsets = [0, 0, 88], sizes = [2, 8, 8], strides = [1, 1, 1]} : vector<2x8x96xf32> to vector<2x8x8xf32>
      "tpu.trace_start"() <{level = 10 : i32, message = "bqd,bkd->bqk"}> : () -> ()
      %cst_45 = arith.constant dense<0.000000e+00> : vector<2x8x8xf32>
      %114 = tpu.matmul %111, %112, %cst_45 {dimension_numbers = #tpu.dot_dimension_numbers<[2], [2], [1], [1], [0, 0, 0, 1, 1, 1], [0], [0]>} : vector<2x8x8xf32>, vector<2x8x8xf32>, vector<2x8x8xf32> -> vector<2x8x8xf32>
      "tpu.trace_stop"() : () -> ()
      %cst_46 = arith.constant 0.353553385 : f32
      %115 = vector.broadcast %cst_46 : f32 to vector<2x8x8xf32>
      %116 = arith.mulf %114, %115 : vector<2x8x8xf32>
      %117 = vector.broadcast %23 : vector<2x1x8xf32> to vector<2x8x8xf32>
      %118 = arith.addf %116, %117 : vector<2x8x8xf32>
      %cst_47 = arith.constant dense<0xFF800000> : vector<2x8xf32>
      %119 = vector.multi_reduction <maximumf>, %118, %cst_47 [2] : vector<2x8x8xf32> to vector<2x8xf32>
      %120 = vector.shape_cast %119 : vector<2x8xf32> to vector<2x8x1xf32>
      %121 = vector.broadcast %120 : vector<2x8x1xf32> to vector<2x8x8xf32>
      %122 = arith.subf %118, %121 : vector<2x8x8xf32>
      %123 = math.exp %122 : vector<2x8x8xf32>
      %cst_48 = arith.constant dense<0.000000e+00> : vector<2x8xf32>
      %124 = vector.multi_reduction <add>, %123, %cst_48 [2] : vector<2x8x8xf32> to vector<2x8xf32>
      %125 = vector.shape_cast %124 : vector<2x8xf32> to vector<2x8x1xf32>
      %126 = tpu.reciprocal %125 {approx = true} : vector<2x8x1xf32> -> vector<2x8x1xf32>
      %127 = vector.broadcast %126 : vector<2x8x1xf32> to vector<2x8x8xf32>
      %128 = arith.mulf %123, %127 : vector<2x8x8xf32>
      "tpu.trace_start"() <{level = 10 : i32, message = "bqk,bkd->bqd"}> : () -> ()
      %cst_49 = arith.constant dense<0.000000e+00> : vector<2x8x8xf32>
      %129 = tpu.matmul %128, %113, %cst_49 {dimension_numbers = #tpu.dot_dimension_numbers<[2], [1], [1], [2], [0, 0, 0, 1, 1, 2], [0], [0]>} : vector<2x8x8xf32>, vector<2x8x8xf32>, vector<2x8x8xf32> -> vector<2x8x8xf32>
      "tpu.trace_stop"() : () -> ()
      %130 = tpu.concatenate %72, %91, %110, %129 in 2 : vector<2x8x8xf32>, vector<2x8x8xf32>, vector<2x8x8xf32>, vector<2x8x8xf32> -> vector<2x8x32xf32>
      %131 = vector.shape_cast %130 : vector<2x8x32xf32> to vector<16x32xf32>
      %132 = arith.truncf %131 : vector<16x32xf32> to vector<16x32xbf16>
      %133 = arith.index_cast %arg21 : i32 to index
      %c0_50 = arith.constant 0 : index
      %c0_51 = arith.constant 0 : index
      %134 = vector.load %arg6[%133, %c0_50, %c0_51] : memref<2x32x32xbf16, #tpu.memory_space<vmem>>, vector<1x32x32xbf16>
      %135 = vector.shape_cast %134 : vector<1x32x32xbf16> to vector<32x32xbf16>
      %cst_52 = arith.constant dense<0.000000e+00> : vector<16x32xf32>
      %136 = tpu.matmul %132, %135, %cst_52 {dimension_numbers = #tpu.dot_dimension_numbers<[1], [0], [0], [1], [0, 0, 1, 1], [], []>} : vector<16x32xbf16>, vector<32x32xbf16>, vector<16x32xf32> -> vector<16x32xf32>
      %137 = arith.index_cast %arg21 : i32 to index
      %c0_53 = arith.constant 0 : index
      %c0_54 = arith.constant 0 : index
      %138 = vector.load %arg7[%137, %c0_53, %c0_54] : memref<2x1x32xf32, #tpu.memory_space<vmem>>, vector<1x1x32xf32>
      %139 = vector.shape_cast %138 : vector<1x1x32xf32> to vector<1x32xf32>
      %140 = vector.broadcast %139 : vector<1x32xf32> to vector<16x32xf32>
      %141 = arith.addf %136, %140 : vector<16x32xf32>
      %142 = arith.addf %141, %arg22 : vector<16x32xf32>
      %143 = arith.index_cast %arg21 : i32 to index
      %c0_55 = arith.constant 0 : index
      %c0_56 = arith.constant 0 : index
      %144 = vector.load %arg8[%143, %c0_55, %c0_56] : memref<2x1x32xf32, #tpu.memory_space<vmem>>, vector<1x1x32xf32>
      %145 = vector.shape_cast %144 : vector<1x1x32xf32> to vector<1x32xf32>
      %146 = arith.index_cast %arg21 : i32 to index
      %c0_57 = arith.constant 0 : index
      %c0_58 = arith.constant 0 : index
      %147 = vector.load %arg9[%146, %c0_57, %c0_58] : memref<2x1x32xf32, #tpu.memory_space<vmem>>, vector<1x1x32xf32>
      %148 = vector.shape_cast %147 : vector<1x1x32xf32> to vector<1x32xf32>
      %cst_59 = arith.constant dense<0.000000e+00> : vector<16xf32>
      %149 = vector.multi_reduction <add>, %142, %cst_59 [1] : vector<16x32xf32> to vector<16xf32>
      %150 = vector.shape_cast %149 : vector<16xf32> to vector<16x1xf32>
      %cst_60 = arith.constant 3.200000e+01 : f32
      %151 = vector.broadcast %cst_60 : f32 to vector<16x1xf32>
      %152 = arith.divf %150, %151 : vector<16x1xf32>
      %153 = vector.broadcast %152 : vector<16x1xf32> to vector<16x32xf32>
      %154 = arith.subf %142, %153 : vector<16x32xf32>
      %155 = arith.mulf %154, %154 : vector<16x32xf32>
      %cst_61 = arith.constant dense<0.000000e+00> : vector<16xf32>
      %156 = vector.multi_reduction <add>, %155, %cst_61 [1] : vector<16x32xf32> to vector<16xf32>
      %157 = vector.shape_cast %156 : vector<16xf32> to vector<16x1xf32>
      %cst_62 = arith.constant 3.200000e+01 : f32
      %158 = vector.broadcast %cst_62 : f32 to vector<16x1xf32>
      %159 = arith.divf %157, %158 : vector<16x1xf32>
      %cst_63 = arith.constant 9.99999996E-13 : f32
      %160 = vector.broadcast %cst_63 : f32 to vector<16x1xf32>
      %161 = arith.addf %159, %160 : vector<16x1xf32>
      %162 = math.rsqrt %161 : vector<16x1xf32>
      %163 = vector.broadcast %162 : vector<16x1xf32> to vector<16x32xf32>
      %164 = arith.mulf %154, %163 : vector<16x32xf32>
      %165 = vector.broadcast %145 : vector<1x32xf32> to vector<16x32xf32>
      %166 = arith.mulf %164, %165 : vector<16x32xf32>
      %167 = vector.broadcast %148 : vector<1x32xf32> to vector<16x32xf32>
      %168 = arith.addf %166, %167 : vector<16x32xf32>
      %169 = arith.truncf %168 : vector<16x32xf32> to vector<16x32xbf16>
      %170 = arith.index_cast %arg21 : i32 to index
      %c0_64 = arith.constant 0 : index
      %c0_65 = arith.constant 0 : index
      %171 = vector.load %arg10[%170, %c0_64, %c0_65] : memref<2x32x64xbf16, #tpu.memory_space<vmem>>, vector<1x32x64xbf16>
      %172 = vector.shape_cast %171 : vector<1x32x64xbf16> to vector<32x64xbf16>
      %cst_66 = arith.constant dense<0.000000e+00> : vector<16x64xf32>
      %173 = tpu.matmul %169, %172, %cst_66 {dimension_numbers = #tpu.dot_dimension_numbers<[1], [0], [0], [1], [0, 0, 1, 1], [], []>} : vector<16x32xbf16>, vector<32x64xbf16>, vector<16x64xf32> -> vector<16x64xf32>
      %174 = arith.index_cast %arg21 : i32 to index
      %c0_67 = arith.constant 0 : index
      %c0_68 = arith.constant 0 : index
      %175 = vector.load %arg11[%174, %c0_67, %c0_68] : memref<2x1x64xf32, #tpu.memory_space<vmem>>, vector<1x1x64xf32>
      %176 = vector.shape_cast %175 : vector<1x1x64xf32> to vector<1x64xf32>
      %177 = vector.broadcast %176 : vector<1x64xf32> to vector<16x64xf32>
      %178 = arith.addf %173, %177 : vector<16x64xf32>
      %cst_69 = arith.constant 5.000000e-01 : f32
      %179 = vector.broadcast %cst_69 : f32 to vector<16x64xf32>
      %180 = arith.mulf %179, %178 : vector<16x64xf32>
      %cst_70 = arith.constant 4.471500e-02 : f32
      %181 = vector.broadcast %cst_70 : f32 to vector<16x64xf32>
      %182 = arith.mulf %181, %178 : vector<16x64xf32>
      %183 = arith.mulf %182, %178 : vector<16x64xf32>
      %184 = arith.mulf %183, %178 : vector<16x64xf32>
      %185 = arith.addf %178, %184 : vector<16x64xf32>
      %cst_71 = arith.constant 0.797884583 : f32
      %186 = vector.broadcast %cst_71 : f32 to vector<16x64xf32>
      %187 = arith.mulf %186, %185 : vector<16x64xf32>
      %188 = math.tanh %187 : vector<16x64xf32>
      %cst_72 = arith.constant 1.000000e+00 : f32
      %189 = vector.broadcast %cst_72 : f32 to vector<16x64xf32>
      %190 = arith.addf %189, %188 : vector<16x64xf32>
      %191 = arith.mulf %180, %190 : vector<16x64xf32>
      %192 = arith.truncf %191 : vector<16x64xf32> to vector<16x64xbf16>
      %193 = arith.index_cast %arg21 : i32 to index
      %c0_73 = arith.constant 0 : index
      %c0_74 = arith.constant 0 : index
      %194 = vector.load %arg12[%193, %c0_73, %c0_74] : memref<2x64x32xbf16, #tpu.memory_space<vmem>>, vector<1x64x32xbf16>
      %195 = vector.shape_cast %194 : vector<1x64x32xbf16> to vector<64x32xbf16>
      %cst_75 = arith.constant dense<0.000000e+00> : vector<16x32xf32>
      %196 = tpu.matmul %192, %195, %cst_75 {dimension_numbers = #tpu.dot_dimension_numbers<[1], [0], [0], [1], [0, 0, 1, 1], [], []>} : vector<16x64xbf16>, vector<64x32xbf16>, vector<16x32xf32> -> vector<16x32xf32>
      %197 = arith.index_cast %arg21 : i32 to index
      %c0_76 = arith.constant 0 : index
      %c0_77 = arith.constant 0 : index
      %198 = vector.load %arg13[%197, %c0_76, %c0_77] : memref<2x1x32xf32, #tpu.memory_space<vmem>>, vector<1x1x32xf32>
      %199 = vector.shape_cast %198 : vector<1x1x32xf32> to vector<1x32xf32>
      %200 = vector.broadcast %199 : vector<1x32xf32> to vector<16x32xf32>
      %201 = arith.addf %196, %200 : vector<16x32xf32>
      %202 = arith.addf %201, %168 : vector<16x32xf32>
      %203 = arith.index_cast %arg21 : i32 to index
      %c0_78 = arith.constant 0 : index
      %c0_79 = arith.constant 0 : index
      %204 = vector.load %arg14[%203, %c0_78, %c0_79] : memref<2x1x32xf32, #tpu.memory_space<vmem>>, vector<1x1x32xf32>
      %205 = vector.shape_cast %204 : vector<1x1x32xf32> to vector<1x32xf32>
      %206 = arith.index_cast %arg21 : i32 to index
      %c0_80 = arith.constant 0 : index
      %c0_81 = arith.constant 0 : index
      %207 = vector.load %arg15[%206, %c0_80, %c0_81] : memref<2x1x32xf32, #tpu.memory_space<vmem>>, vector<1x1x32xf32>
      %208 = vector.shape_cast %207 : vector<1x1x32xf32> to vector<1x32xf32>
      %cst_82 = arith.constant dense<0.000000e+00> : vector<16xf32>
      %209 = vector.multi_reduction <add>, %202, %cst_82 [1] : vector<16x32xf32> to vector<16xf32>
      %210 = vector.shape_cast %209 : vector<16xf32> to vector<16x1xf32>
      %cst_83 = arith.constant 3.200000e+01 : f32
      %211 = vector.broadcast %cst_83 : f32 to vector<16x1xf32>
      %212 = arith.divf %210, %211 : vector<16x1xf32>
      %213 = vector.broadcast %212 : vector<16x1xf32> to vector<16x32xf32>
      %214 = arith.subf %202, %213 : vector<16x32xf32>
      %215 = arith.mulf %214, %214 : vector<16x32xf32>
      %cst_84 = arith.constant dense<0.000000e+00> : vector<16xf32>
      %216 = vector.multi_reduction <add>, %215, %cst_84 [1] : vector<16x32xf32> to vector<16xf32>
      %217 = vector.shape_cast %216 : vector<16xf32> to vector<16x1xf32>
      %cst_85 = arith.constant 3.200000e+01 : f32
      %218 = vector.broadcast %cst_85 : f32 to vector<16x1xf32>
      %219 = arith.divf %217, %218 : vector<16x1xf32>
      %cst_86 = arith.constant 9.99999996E-13 : f32
      %220 = vector.broadcast %cst_86 : f32 to vector<16x1xf32>
      %221 = arith.addf %219, %220 : vector<16x1xf32>
      %222 = math.rsqrt %221 : vector<16x1xf32>
      %223 = vector.broadcast %222 : vector<16x1xf32> to vector<16x32xf32>
      %224 = arith.mulf %214, %223 : vector<16x32xf32>
      %225 = vector.broadcast %205 : vector<1x32xf32> to vector<16x32xf32>
      %226 = arith.mulf %224, %225 : vector<16x32xf32>
      %227 = vector.broadcast %208 : vector<1x32xf32> to vector<16x32xf32>
      %228 = arith.addf %226, %227 : vector<16x32xf32>
      scf.yield %228 : vector<16x32xf32>
    }
    %c2_i32_12 = arith.constant 2 : i32
    %26 = vector.shape_cast %25 : vector<16x32xf32> to vector<2x8x32xf32>
    %27 = vector.extract_strided_slice %26 {offsets = [0, 0, 0], sizes = [2, 1, 32], strides = [1, 1, 1]} : vector<2x8x32xf32> to vector<2x1x32xf32>
    %28 = vector.shape_cast %27 : vector<2x1x32xf32> to vector<2x32xf32>
    %29 = arith.truncf %28 : vector<2x32xf32> to vector<2x32xbf16>
    %c0_13 = arith.constant 0 : index
    %c0_14 = arith.constant 0 : index
    %30 = vector.load %arg16[%c0_13, %c0_14] : memref<32x32xbf16, #tpu.memory_space<vmem>>, vector<32x32xbf16>
    %cst_15 = arith.constant dense<0.000000e+00> : vector<2x32xf32>
    %31 = tpu.matmul %29, %30, %cst_15 {dimension_numbers = #tpu.dot_dimension_numbers<[1], [0], [0], [1], [0, 0, 1, 1], [], []>} : vector<2x32xbf16>, vector<32x32xbf16>, vector<2x32xf32> -> vector<2x32xf32>
    %c0_16 = arith.constant 0 : index
    %c0_17 = arith.constant 0 : index
    %32 = vector.load %arg17[%c0_16, %c0_17] : memref<1x32xf32, #tpu.memory_space<vmem>>, vector<1x32xf32>
    %33 = vector.broadcast %32 : vector<1x32xf32> to vector<2x32xf32>
    %34 = arith.addf %31, %33 : vector<2x32xf32>
    %35 = math.tanh %34 : vector<2x32xf32>
    %36 = arith.truncf %35 : vector<2x32xf32> to vector<2x32xbf16>
    %c0_18 = arith.constant 0 : index
    %c0_19 = arith.constant 0 : index
    %37 = vector.load %arg18[%c0_18, %c0_19] : memref<32x128xbf16, #tpu.memory_space<vmem>>, vector<32x128xbf16>
    %cst_20 = arith.constant dense<0.000000e+00> : vector<2x128xf32>
    %38 = tpu.matmul %36, %37, %cst_20 {dimension_numbers = #tpu.dot_dimension_numbers<[1], [0], [0], [1], [0, 0, 1, 1], [], []>} : vector<2x32xbf16>, vector<32x128xbf16>, vector<2x128xf32> -> vector<2x128xf32>
    %c0_21 = arith.constant 0 : index
    %c0_22 = arith.constant 0 : index
    %39 = vector.load %arg19[%c0_21, %c0_22] : memref<1x128xf32, #tpu.memory_space<vmem>>, vector<1x128xf32>
    %40 = vector.broadcast %39 : vector<1x128xf32> to vector<2x128xf32>
    %41 = arith.addf %38, %40 : vector<2x128xf32>
    %c0_23 = arith.constant 0 : index
    %c0_24 = arith.constant 0 : index
    %42 = vector.load %arg20[%c0_23, %c0_24] : memref<2x128xf32, #tpu.memory_space<vmem>>, vector<2x128xf32>
    tpu.vector_store %arg20[%c0_23, %c0_24], %41 {strides = array<i32>} : memref<2x128xf32, #tpu.memory_space<vmem>>, vector<2x128xf32>,
    return
  }
}

</mosaic_0001>

<bundles_post_ra>
// kernel: pragtag_forward.1
= control target key start
LH: loop header
LB: loop body
LE: loop exit
PB: predicated region body
PF: predicated region fallthrough
CT: control target
= control target key end

     0   :  { %s2961_s0 = inlined_call_operand.vmem [shape: f32[16,32], index: 0, kind: input, shape index: {}]   ;;  %s2962_s1 = inlined_call_operand.vmem [shape: f32[2,1,8], index: 1, kind: input, shape index: {}]   ;;  %s2963_s2 = inlined_call_operand.vmem [shape: f32[1,32], index: 2, kind: input, shape index: {}]   ;;  %s2964_s3 = inlined_call_operand.vmem [shape: f32[1,32], index: 3, kind: input, shape index: {}]   ;;  %s2965_s4 = inlined_call_operand.vmem [shape: bf16[2,32,96], index: 4, kind: input, shape index: {}]   ;;  %s2966_s5 = inlined_call_operand.vmem [shape: f32[2,1,96], index: 5, kind: input, shape index: {}]   ;;  %s2967_s6 = inlined_call_operand.vmem [shape: bf16[2,32,32], index: 6, kind: input, shape index: {}]   ;;  %s2968_s7 = inlined_call_operand.vmem [shape: f32[2,1,32], index: 7, kind: input, shape index: {}]   ;;  %s2969_s8 = inlined_call_operand.vmem [shape: f32[2,1,32], index: 8, kind: input, shape index: {}]   ;;  %s2970_s9 = inlined_call_operand.vmem [shape: f32[2,1,32], index: 9, kind: input, shape index: {}]   ;;  %s2971_s10 = inlined_call_operand.vmem [shape: bf16[2,32,64], index: 10, kind: input, shape index: {}]   ;;  %s2972_s11 = inlined_call_operand.vmem [shape: f32[2,1,64], index: 11, kind: input, shape index: {}]   ;;  %s2973_s12 = inlined_call_operand.vmem [shape: bf16[2,64,32], index: 12, kind: input, shape index: {}]   ;;  %s2974_s13 = inlined_call_operand.vmem [shape: f32[2,1,32], index: 13, kind: input, shape index: {}]   ;;  %s2975_s14 = inlined_call_operand.vmem [shape: f32[2,1,32], index: 14, kind: input, shape index: {}]   ;;  %s2976_s15 = inlined_call_operand.vmem [shape: f32[2,1,32], index: 15, kind: input, shape index: {}]   ;;  %s2977_s16 = inlined_call_operand.vmem [shape: bf16[32,32], index: 16, kind: input, shape index: {}]   ;;  %s2978_s17 = inlined_call_operand.vmem [shape: f32[1,32], index: 17, kind: input, shape index: {}]   ;;  %s2979_s18 = inlined_call_operand.vmem [shape: bf16[32,128], index: 18, kind: input, shape index: {}]   ;;  %s2980_s19 = inlined_call_operand.vmem [shape: f32[1,128], index: 19, kind: input, shape index: {}]   ;;  %s2981_s20 = inlined_call_operand.hbm [shape: f32[2,128], index: 20, kind: output, shape index: {}]  }
   0x1   :  { %2984 = sst [smem:[#allocation5_spill]] %s2961_s0 }
   0x2   :  { %2985 = sst [smem:[#allocation6_spill]] %s2962_s1 }
   0x3   :  { %2986 = sst [smem:[#allocation7_spill]] %s2963_s2 }
   0x4   :  { %2987 = sst [smem:[#allocation8_spill]] %s2964_s3 }
   0x5   :  { %2988 = sst [smem:[#allocation9_spill]] %s2965_s4 }
   0x6   :  { %s2989_s23 = sld [smem:[#allocation5_spill]]  ;;  %vm71_vm0 = vcmask 261120  }
   0xc   :  { %v67_v0 = vld [vmem:[%s2989_s23] sm:$0xff]  ;;  %v68_v1 = vld [vmem:[%s2989_s23 + $0x8] sm:$0xff] }
   0xd   :  { %25 = vsyncpa [#allocation3], 0  ;;  %v72_v2 = vsel %vm71_vm0, %v67_v0, 0.0  ;;  %v75_v3 = vsel %vm71_vm0, %v68_v1, 0.0  ;;  %s2990_s26 = sld [smem:[#allocation6_spill]]  ;;  %s2991_s30 = sld [smem:[#allocation7_spill]] }
   0xe   :  { %73 = vadd.xlane.f32.xlu0 %v72_v2  ;;  %s2992_s1 = sld [smem:[#allocation8_spill]]  ;;  %s2683_s22 = smov 0  }
  0x12   :  { %76 = vadd.xlane.f32.xlu0 %v75_v3 }
  0x13   :  { %v2666_v14 = vld [vmem:[%s2990_s26] ss:$0 sm:$0xff]  ;;  %v2671_v15 = vld [vmem:[%s2990_s26 + $0x1] ss:$0 sm:$0xff] }
  0x14   :  { %v2107_v23 = vld [vmem:[%s2991_s30] ss:$0 sm:$0xff] }
  0x15   :  { %v2108_v25 = vld [vmem:[%s2992_s1] ss:$0 sm:$0xff] }
  0x9b   :  { %v74_v4 = vpop.xlane.xlu0 %73 }
  0x9c   :  { %v79_v5 = vmul.f32 0.03125, %v74_v4 }
  0x9e   :  { %v81_v6 = vsub.f32 %v67_v0, %v79_v5 }
  0x9f   :  { %v77_v7 = vpop.xlane.xlu0 %76 }
  0xa0   :  { %v80_v8 = vmul.f32 0.03125, %v77_v7  ;;  %v83_v9 = vmul.f32 %v81_v6, %v81_v6 }
  0xa2   :  { %v82_v10 = vsub.f32 %v68_v1, %v80_v8  ;;  %v85_v11 = vsel %vm71_vm0, %v83_v9, 0.0 }
  0xa3   :  { %86 = vadd.xlane.f32.xlu1 %v85_v11 }
  0xa4   :  { %v84_v12 = vmul.f32 %v82_v10, %v82_v10 }
  0xa6   :  { %v88_v13 = vsel %vm71_vm0, %v84_v12, 0.0 }
  0xa7   :  { %89 = vadd.xlane.f32.xlu1 %v88_v13 }
 0x130   :  { %v87_v16 = vpop.xlane.xlu1 %86 }
 0x131   :  { %v91_v17 = vmul.f32 0.03125, %v87_v16 }
 0x133   :  { %v93_v18 = vadd.f32 1e-12, %v91_v17 }
 0x134   :  { %v90_v19 = vpop.xlane.xlu1 %89 }
 0x135   :  { %2402 = vrsqrt.f32 %v93_v18  ;;  %v92_v20 = vmul.f32 0.03125, %v90_v19 }
 0x137   :  { %v94_v21 = vadd.f32 1e-12, %v92_v20 }
 0x139   :  { %2404 = vrsqrt.f32 %v94_v21 }
 0x13f   :  { %v2403_v22 = vpop.eup %2402 }
 0x140   :  { %v97_v24 = vmul.f32 %v2403_v22, %v81_v6 }
 0x142   :  { %v105_v26 = vmul.f32 %v2107_v23, %v97_v24 }
 0x143   :  { %v2405_v27 = vpop.eup %2404 }
 0x144   :  { %v113_v28 = vadd.f32 %v2108_v25, %v105_v26   ;;  %v98_v29 = vmul.f32 %v2405_v27, %v82_v10 }
 0x146   :  { %v106_v30 = vmul.f32 %v2107_v23, %v98_v29 }
 0x148   :  { %v114_v31 = vadd.f32 %v2108_v25, %v106_v30  }
 0x149 LB: > { %v2529_v32 = vmov 0.0   ;;  %vm2530_vm1 = vmmov 0   ;;  %s2171_s23 = sshll.u32 %s2527_s22, 4  ;;  %s2993_s25 = sld [smem:[#allocation9_spill]]  ;;  %v125_v35 = vpack.c.bf16 %v2519_v31, %v2523_v28  ;;  %vm200_vm2 = vcmask 64512   ;;  %s2527_s22 = sphi %s2683_s22, %s122_s22   ;;  %v2523_v28 = vphi %v113_v28, %v2995_v28   ;;  %v2519_v31 = vphi %v114_v31, %v2994_v31  }
 0x14a   : > { %2227 = vmatprep.subr.bf16.mxu0 %v2529_v32  ;;  %2231 = vmatprep.mubr.msk.bf16.mxu0 %vm2530_vm1, %v2529_v32  ;;  %s2707_s28 = scalar_lea.vmem %s2967_s6, %s2171_s23  ;;  %s2712_s30 = scalar_lea.vmem %s2971_s10, %s2171_s23  ;;  %vm1570_vm3 = vcmask 130048   ;;  %vm1573_vm4 = vcmask 195584   ;;  %vm1828_vm5 = vcmask 523264  }
 0x14b   : > { %2240 = vmatprep.subr.mxu1 %v2529_v32  ;;  %2242 = vmatprep.mubr.msk.f32.mxu1 %vm2530_vm1, %v2529_v32  ;;  %s133_s1 = scalar_lea.vmem %s2966_s5, %s2527_s22  ;;  %s2532_s24 = smov 64  }
 0x14c   : > { %v2111_v36 = vld [vmem:[%s133_s1] ss:$0 sm:$0xff]  ;;  %s2533_s2 = smov 88   ;;  %s2536_s26 = smov 80  }
 0x14d   : > { %s2537_s27 = smov 112   ;;  %s2538_s4 = smov 48  }
 0x14e   : > { %s2539_s29 = smov 72   ;;  %s2540_s0 = smov 104  }
 0x14f   : > { %s128_s3 = scalar_lea.vmem %s2993_s25, %s2171_s23  ;;  %s2531_s23 = smov 96  }
 0x150   : > { %v2421_v33 = vld [vmem:[%s128_s3] sm:$0xff]   ;;  %v2422_v34 = vld [vmem:[%s128_s3 + $0x8] sm:$0xff]   ;;  %s2534_s25 = smov 120   ;;  %s2535_s3 = smov 56  }
 0x151   : > { %2228 = vmatpush3.bf16.msra.mxu0 %v2421_v33  ;;  %s2541_s21 = smov 40   ;;  %s2542_s1 = smov 8  }
 0x152   : > { %2229 = vmatprep.subr.bf16.mxu0 %v2529_v32 }
 0x155   : > { %2230 = vmatpush3.bf16.msra.mxu0 %v2422_v34 }
 0x156   : > { %2235 = vmatprep.subr.mxu0 %v2529_v32 }
 0x158   : > { %2232 = vmatmul.mubr.msk.bf16.vlgmr.msra.gmra.mrb[0].mxu0 %vm71_vm0, %v125_v35 }
 0x159   : > { %2237 = vmatprep.mubr.msk.f32.mxu0 %vm2530_vm1, %v2529_v32 }
 0x22b   : > { %v190_v37 = vpop.f32.mrb[0].mxu0 }
 0x22c   : > { %v2725_v38 = vadd.f32 %v2111_v36, %v190_v37  ;;  %v2233_v39 = vpop.f32.mrb[1].mxu0 }
 0x22d   : > { %v193_v40 = vpop.f32.mrb[2].mxu0 }
 0x22e   : > { %198 = vrot.lane.b32.xlu0 %v2725_v38, %s2531_s23  ;;  %v2234_v41 = vpop.f32.mrb[3].mxu0  ;;  %v2728_v42 = vadd.f32 %v2111_v36, %v193_v40 }
 0x232   : > { %276 = vrot.lane.b32.xlu0 %v2728_v42, %s2531_s23  ;;  %s2543_s23 = smov 16  }
 0x2a0   : > { %v199_v43 = vpop.permute.xlu0 %198 }
 0x2a1   : > { %2236 = vmatpush3.xpose.msk.msra.mxu0 %vm200_vm2, %v199_v43 }
 0x2a2   : > { %2250 = vmatprep.subr.mxu0 %v2529_v32 }
 0x2a4   : > { %2238 = vmatmul.mubr.msk.f32.vlgmr.msra.gmra.mrb[4].mxu0 %vm200_vm2, %v2725_v38  ;;  %v277_v44 = vpop.permute.xlu0 %276 }
 0x2a5   : > { %2241 = vmatpush3.xpose.msk.msra.mxu1 %vm200_vm2, %v277_v44  ;;  %2252 = vmatprep.mubr.msk.f32.mxu0 %vm2530_vm1, %v2529_v32 }
 0x2a6   : > { %2245 = vmatprep.subr.mxu1 %v2529_v32 }
 0x2a8   : > { %2243 = vmatmul.mubr.msk.f32.vlgmr.msra.gmra.mrb[0].mxu1 %vm200_vm2, %v2728_v42 }
 0x2a9   : > { %2247 = vmatprep.mubr.msk.f32.mxu1 %vm2530_vm1, %v2529_v32 }
 0x377   : > { %v271_v45 = vpop.f32.mrb[4].mxu0 }
 0x378   : > { %v352_v46 = vmul.f32 0.35355338, %v271_v45  ;;  %v2239_v47 = vpop.f32.mrb[5].mxu0 }
 0x37a   : > { %v366_v48 = vadd.f32 %v2666_v14, %v352_v46 }
 0x37b   : > { %v348_v49 = vpop.f32.mrb[0].mxu1 }
 0x37c   : > { %v353_v50 = vmul.f32 0.35355338, %v348_v49  ;;  %v2244_v51 = vpop.f32.mrb[1].mxu1  ;;  %v368_v52 = vsel %vm200_vm2, %v366_v48, -inf }
 0x37d   : > { %369 = vmax.xlane.f32.xlu1 %v368_v52 }
 0x37e   : > { %v367_v53 = vadd.f32 %v2671_v15, %v353_v50 }
 0x380   : > { %v371_v54 = vsel %vm200_vm2, %v367_v53, -inf }
 0x381   : > { %372 = vmax.xlane.f32.xlu1 %v371_v54 }
 0x392   : > { %390 = vrot.lane.b32.xlu1 %v2725_v38, %s2532_s24 }
 0x396   : > { %466 = vrot.lane.b32.xlu1 %v2728_v42, %s2532_s24  ;;  %s2544_s24 = smov 24  }
 0x39a   : > { %544 = vrot.lane.b32.xlu1 %v2725_v38, %s2533_s2 }
 0x39e   : > { %622 = vrot.lane.b32.xlu1 %v2728_v42, %s2533_s2  ;;  %s1702_s2 = scalar_lea.vmem %s2972_s11, %s2527_s22 }
 0x40a   : > { %v370_v55 = vpop.xlane.xlu1 %369 }
 0x40b   : > { %v374_v56 = vsub.f32 %v366_v48, %v370_v55 }
 0x40d   : > { %v376_v57 = vmul.f32 1.442695, %v374_v56 }
 0x40e   : > { %v373_v58 = vpop.xlane.xlu1 %372 }
 0x40f   : > { %2431 = vpow2.f32 %v376_v57  ;;  %v375_v59 = vsub.f32 %v367_v53, %v373_v58 }
 0x411   : > { %v378_v60 = vmul.f32 1.442695, %v375_v59 }
 0x412   : > { %v391_v61 = vpop.permute.xlu1 %390 }
 0x413   : > { %2433 = vpow2.f32 %v378_v60  ;;  %2246 = vmatpush3.msra.mxu1 %v391_v61 }
 0x414   : > { %2255 = vmatprep.subr.mxu1 %v2529_v32 }
 0x416   : > { %v467_v62 = vpop.permute.xlu1 %466 }
 0x417   : > { %2251 = vmatpush3.msra.mxu0 %v467_v62 }
 0x418   : > { %2260 = vmatprep.subr.mxu0 %v2529_v32 }
 0x419   : > { %v2432_v63 = vpop.eup %2431 }
 0x41a   : > { %v380_v0 = vsel %vm200_vm2, %v2432_v63, 0.0  ;;  %v545_v3 = vpop.permute.xlu1 %544 }
 0x41b   : > { %381 = vadd.xlane.f32.xlu0 %v380_v0 }
 0x41d   : > { %v2434_v1 = vpop.eup %2433 }
 0x41e   : > { %v383_v2 = vsel %vm200_vm2, %v2434_v1, 0.0  ;;  %v623_v4 = vpop.permute.xlu1 %622 }
 0x41f   : > { %384 = vadd.xlane.f32.xlu1 %v383_v2 }
 0x430   : > { %620 = vrot.lane.b32.xlu1 %v2728_v42, %s2534_s25 }
 0x431   : > { %542 = vrot.lane.b32.xlu0 %v2725_v38, %s2534_s25  ;;  %s1583_s25 = scalar_lea.vmem %s2968_s7, %s2527_s22 }
 0x4a8   : > { %v382_v5 = vpop.xlane.xlu0 %381 }
 0x4a9   : > { %2435 = vrcp.f32 %v382_v5 }
 0x4ac   : > { %v385_v6 = vpop.xlane.xlu1 %384  ;;  %v543_v11 = vpop.permute.xlu0 %542 }
 0x4ad   : > { %2437 = vrcp.f32 %v385_v6 }
 0x4b0   : > { %v621_v12 = vpop.permute.xlu1 %620 }
 0x4b3   : > { %v2436_v7 = vpop.eup %2435 }
 0x4b4   : > { %v388_v8 = vmul.f32 %v2436_v7, %v2432_v63 }
 0x4b6   : > { %2248 = vmatmul.mubr.msk.f32.vlgmr.msra.gmra.mrb[2].mxu1 %vm200_vm2, %v388_v8 }
 0x4b7   : > { %v2438_v9 = vpop.eup %2437  ;;  %2256 = vmatpush3.xpose.msk.msra.mxu1 %vm200_vm2, %v545_v3  ;;  %2257 = vmatprep.mubr.msk.f32.mxu1 %vm2530_vm1, %v2529_v32 }
 0x4b8   : > { %v389_v10 = vmul.f32 %v2438_v9, %v2434_v1  ;;  %2265 = vmatprep.subr.mxu1 %v2529_v32 }
 0x4ba   : > { %2253 = vmatmul.mubr.msk.f32.vlgmr.msra.gmra.mrb[6].mxu0 %vm200_vm2, %v389_v10  ;;  %2258 = vmatmul.mubr.msk.f32.vlgmr.msra.gmra.mrb[4].mxu1 %vm200_vm2, %v543_v11 }
 0x4bb   : > { %2261 = vmatpush3.xpose.msk.msra.mxu0 %vm200_vm2, %v623_v4  ;;  %2262 = vmatprep.mubr.msk.f32.mxu0 %vm2530_vm1, %v2529_v32 }
 0x4bc   : > { %2270 = vmatprep.subr.mxu0 %v2529_v32  ;;  %2267 = vmatprep.mubr.msk.f32.mxu1 %vm2530_vm1, %v2529_v32 }
 0x4be   : > { %2263 = vmatmul.mubr.msk.f32.vlgmr.msra.gmra.mrb[8].mxu0 %vm200_vm2, %v621_v12 }
 0x4bf   : > { %2272 = vmatprep.mubr.msk.f32.mxu0 %vm2530_vm1, %v2529_v32 }
 0x589   : > { %v2773_v13 = vpop.f32.mrb[2].mxu1 }
 0x58a   : > { %v2249_v16 = vpop.f32.mrb[3].mxu1 }
 0x58d   : > { %v2775_v17 = vpop.f32.mrb[6].mxu0  ;;  %v616_v18 = vpop.f32.mrb[4].mxu1 }
 0x58e   : > { %v698_v19 = vmul.f32 0.35355338, %v616_v18  ;;  %v2254_v20 = vpop.f32.mrb[7].mxu0  ;;  %v2259_v21 = vpop.f32.mrb[5].mxu1 }
 0x590   : > { %v700_v22 = vadd.f32 %v2666_v14, %v698_v19 }
 0x591   : > { %v694_v23 = vpop.f32.mrb[8].mxu0 }
 0x592   : > { %v699_v24 = vmul.f32 0.35355338, %v694_v23  ;;  %v2264_v25 = vpop.f32.mrb[9].mxu0  ;;  %v702_v26 = vsel %vm200_vm2, %v700_v22, -inf }
 0x593   : > { %703 = vmax.xlane.f32.xlu1 %v702_v26 }
 0x594   : > { %v701_v27 = vadd.f32 %v2671_v15, %v699_v24 }
 0x596   : > { %v705_v29 = vsel %vm200_vm2, %v701_v27, -inf }
 0x597   : > { %706 = vmax.xlane.f32.xlu0 %v705_v29 }
 0x5a4   : > { %724 = vrot.lane.b32.xlu1 %v2725_v38, %s2535_s3 }
 0x5a8   : > { %878 = vrot.lane.b32.xlu1 %v2725_v38, %s2536_s26 }
 0x5ac   : > { %956 = vrot.lane.b32.xlu1 %v2728_v42, %s2536_s26  ;;  %s1796_s26 = scalar_lea.vmem %s2974_s13, %s2527_s22 }
 0x5ad   : > { %800 = vrot.lane.b32.xlu0 %v2728_v42, %s2535_s3 }
 0x5b1   : > { %876 = vrot.lane.b32.xlu0 %v2725_v38, %s2537_s27 }
 0x620   : > { %v704_v30 = vpop.xlane.xlu1 %703 }
 0x621   : > { %v708_v33 = vsub.f32 %v700_v22, %v704_v30 }
 0x623   : > { %v710_v34 = vmul.f32 1.442695, %v708_v33 }
 0x624   : > { %v725_v35 = vpop.permute.xlu1 %724  ;;  %v707_v36 = vpop.xlane.xlu0 %706 }
 0x625   : > { %2439 = vpow2.f32 %v710_v34  ;;  %v709_v37 = vsub.f32 %v701_v27, %v707_v36  ;;  %2266 = vmatpush3.msra.mxu1 %v725_v35 }
 0x626   : > { %2275 = vmatprep.subr.mxu1 %v2529_v32 }
 0x627   : > { %v712_v39 = vmul.f32 1.442695, %v709_v37 }
 0x628   : > { %v801_v40 = vpop.permute.xlu0 %800  ;;  %v879_v46 = vpop.permute.xlu1 %878 }
 0x629   : > { %2441 = vpow2.f32 %v712_v39  ;;  %2271 = vmatpush3.msra.mxu0 %v801_v40 }
 0x62a   : > { %2280 = vmatprep.subr.mxu0 %v2529_v32 }
 0x62c   : > { %v957_v47 = vpop.permute.xlu1 %956  ;;  %v877_v54 = vpop.permute.xlu0 %876 }
 0x62f   : > { %v2440_v41 = vpop.eup %2439 }
 0x630   : > { %v714_v43 = vsel %vm200_vm2, %v2440_v41, 0.0 }
 0x631   : > { %715 = vadd.xlane.f32.xlu1 %v714_v43 }
 0x633   : > { %v2442_v44 = vpop.eup %2441 }
 0x634   : > { %v717_v45 = vsel %vm200_vm2, %v2442_v44, 0.0 }
 0x635   : > { %718 = vadd.xlane.f32.xlu1 %v717_v45 }
 0x646   : > { %954 = vrot.lane.b32.xlu1 %v2728_v42, %s2537_s27  ;;  %s1649_s27 = scalar_lea.vmem %s2969_s8, %s2527_s22 }
 0x6be   : > { %v716_v48 = vpop.xlane.xlu1 %715 }
 0x6bf   : > { %2443 = vrcp.f32 %v716_v48 }
 0x6c2   : > { %v719_v49 = vpop.xlane.xlu1 %718 }
 0x6c3   : > { %2445 = vrcp.f32 %v719_v49 }
 0x6c6   : > { %v955_v55 = vpop.permute.xlu1 %954 }
 0x6c9   : > { %v2444_v50 = vpop.eup %2443 }
 0x6ca   : > { %v722_v51 = vmul.f32 %v2444_v50, %v2440_v41 }
 0x6cc   : > { %2268 = vmatmul.mubr.msk.f32.vlgmr.msra.gmra.mrb[6].mxu1 %vm200_vm2, %v722_v51 }
 0x6cd   : > { %v2446_v52 = vpop.eup %2445  ;;  %2276 = vmatpush3.xpose.msk.msra.mxu1 %vm200_vm2, %v879_v46  ;;  %2277 = vmatprep.mubr.msk.f32.mxu1 %vm2530_vm1, %v2529_v32 }
 0x6ce   : > { %v723_v53 = vmul.f32 %v2446_v52, %v2442_v44  ;;  %2285 = vmatprep.subr.mxu1 %v2529_v32 }
 0x6d0   : > { %2273 = vmatmul.mubr.msk.f32.vlgmr.msra.gmra.mrb[10].mxu0 %vm200_vm2, %v723_v53  ;;  %2278 = vmatmul.mubr.msk.f32.vlgmr.msra.gmra.mrb[8].mxu1 %vm200_vm2, %v877_v54 }
 0x6d1   : > { %2281 = vmatpush3.xpose.msk.msra.mxu0 %vm200_vm2, %v957_v47  ;;  %2282 = vmatprep.mubr.msk.f32.mxu0 %vm2530_vm1, %v2529_v32 }
 0x6d2   : > { %2290 = vmatprep.subr.mxu0 %v2529_v32  ;;  %2287 = vmatprep.mubr.msk.f32.mxu1 %vm2530_vm1, %v2529_v32 }
 0x6d4   : > { %2283 = vmatmul.mubr.msk.f32.vlgmr.msra.gmra.mrb[12].mxu0 %vm200_vm2, %v955_v55 }
 0x6d5   : > { %2292 = vmatprep.mubr.msk.f32.mxu0 %vm2530_vm1, %v2529_v32 }
 0x79f   : > { %v2807_v56 = vpop.f32.mrb[6].mxu1 }
 0x7a0   : > { %v2269_v57 = vpop.f32.mrb[7].mxu1 }
 0x7a3   : > { %v2809_v58 = vpop.f32.mrb[10].mxu0  ;;  %v950_v59 = vpop.f32.mrb[8].mxu1 }
 0x7a4   : > { %v2406_v60 = vpack.i.bf16 %v2809_v58, %v2807_v56  ;;  %v1032_v61 = vmul.f32 0.35355338, %v950_v59  ;;  %v2274_v62 = vpop.f32.mrb[11].mxu0  ;;  %v2279_v63 = vpop.f32.mrb[9].mxu1 }
 0x7a6   : > { %v1034_v0 = vadd.f32 %v2666_v14, %v1032_v61 }
 0x7a7   : > { %v1028_v1 = vpop.f32.mrb[12].mxu0 }
 0x7a8   : > { %v1033_v2 = vmul.f32 0.35355338, %v1028_v1  ;;  %v2284_v3 = vpop.f32.mrb[13].mxu0  ;;  %v1036_v4 = vsel %vm200_vm2, %v1034_v0, -inf }
 0x7a9   : > { %1037 = vmax.xlane.f32.xlu0 %v1036_v4 }
 0x7aa   : > { %v1035_v5 = vadd.f32 %v2671_v15, %v1033_v2 }
 0x7ac   : > { %v1039_v6 = vsel %vm200_vm2, %v1035_v5, -inf }
 0x7ad   : > { %1040 = vmax.xlane.f32.xlu1 %v1039_v6  ;;  %v2424_v6 = vld [vmem:[%s2707_s28 + $0x8] sm:$0xff]  }
 0x7be   : > { %1058 = vrot.lane.b32.xlu1 %v2725_v38, %s2538_s4 }
 0x7bf   : > { %1134 = vrot.lane.b32.xlu0 %v2728_v42, %s2538_s4  ;;  %s1875_s4 = scalar_lea.vmem %s2975_s14, %s2527_s22 }
 0x7c2   : > { %1212 = vrot.lane.b32.xlu1 %v2725_v38, %s2539_s29 }
 0x7c6   : > { %1290 = vrot.lane.b32.xlu1 %v2728_v42, %s2539_s29  ;;  %s1651_s29 = scalar_lea.vmem %s2970_s9, %s2527_s22 }
 0x7ca   : > { %1288 = vrot.lane.b32.xlu1 %v2728_v42, %s2540_s0 }
 0x836   : > { %v1038_v7 = vpop.xlane.xlu0 %1037 }
 0x837   : > { %v1042_v8 = vsub.f32 %v1034_v0, %v1038_v7 }
 0x839   : > { %v1044_v9 = vmul.f32 1.442695, %v1042_v8 }
 0x83a   : > { %v1135_v10 = vpop.permute.xlu0 %1134  ;;  %v1041_v11 = vpop.xlane.xlu1 %1040 }
 0x83b   : > { %2447 = vpow2.f32 %v1044_v9  ;;  %v1043_v12 = vsub.f32 %v1035_v5, %v1041_v11  ;;  %2291 = vmatpush3.msra.mxu0 %v1135_v10 }
 0x83c   : > { %2300 = vmatprep.subr.mxu0 %v2529_v32 }
 0x83d   : > { %v1046_v16 = vmul.f32 1.442695, %v1043_v12 }
 0x83e   : > { %v1059_v18 = vpop.permute.xlu1 %1058 }
 0x83f   : > { %2449 = vpow2.f32 %v1046_v16  ;;  %2286 = vmatpush3.msra.mxu1 %v1059_v18 }
 0x840   : > { %2295 = vmatprep.subr.mxu1 %v2529_v32 }
 0x842   : > { %v1213_v25 = vpop.permute.xlu1 %1212 }
 0x845   : > { %v2448_v19 = vpop.eup %2447 }
 0x846   : > { %v1048_v20 = vsel %vm200_vm2, %v2448_v19, 0.0  ;;  %v1291_v30 = vpop.permute.xlu1 %1290 }
 0x847   : > { %1049 = vadd.xlane.f32.xlu0 %v1048_v20 }
 0x849   : > { %v2450_v21 = vpop.eup %2449 }
 0x84a   : > { %v1051_v22 = vsel %vm200_vm2, %v2450_v21, 0.0  ;;  %v1289_v35 = vpop.permute.xlu1 %1288 }
 0x84b   : > { %1052 = vadd.xlane.f32.xlu0 %v1051_v22 }
 0x861   : > { %1210 = vrot.lane.b32.xlu0 %v2725_v38, %s2540_s0  ;;  %s2174_s0 = sshll.u32 %s2527_s22, 5 }
 0x8d4   : > { %v1050_v23 = vpop.xlane.xlu0 %1049 }
 0x8d5   : > { %2451 = vrcp.f32 %v1050_v23 }
 0x8d8   : > { %v1053_v24 = vpop.xlane.xlu0 %1052 }
 0x8d9   : > { %2453 = vrcp.f32 %v1053_v24 }
 0x8dc   : > { %v1211_v34 = vpop.permute.xlu0 %1210 }
 0x8df   : > { %v2452_v26 = vpop.eup %2451 }
 0x8e0   : > { %v1056_v27 = vmul.f32 %v2452_v26, %v2448_v19 }
 0x8e2   : > { %2288 = vmatmul.mubr.msk.f32.vlgmr.msra.gmra.mrb[10].mxu1 %vm200_vm2, %v1056_v27 }
 0x8e3   : > { %v2454_v29 = vpop.eup %2453  ;;  %2296 = vmatpush3.xpose.msk.msra.mxu1 %vm200_vm2, %v1213_v25  ;;  %2297 = vmatprep.mubr.msk.f32.mxu1 %vm2530_vm1, %v2529_v32 }
 0x8e4   : > { %v1057_v33 = vmul.f32 %v2454_v29, %v2450_v21  ;;  %2305 = vmatprep.subr.mxu1 %v2529_v32 }
 0x8e6   : > { %2293 = vmatmul.mubr.msk.f32.vlgmr.msra.gmra.mrb[14].mxu0 %vm200_vm2, %v1057_v33  ;;  %2298 = vmatmul.mubr.msk.f32.vlgmr.msra.gmra.mrb[12].mxu1 %vm200_vm2, %v1211_v34 }
 0x8e7   : > { %2301 = vmatpush3.xpose.msk.msra.mxu0 %vm200_vm2, %v1291_v30  ;;  %2302 = vmatprep.mubr.msk.f32.mxu0 %vm2530_vm1, %v2529_v32 }
 0x8e8   : > { %2310 = vmatprep.subr.mxu0 %v2529_v32  ;;  %2307 = vmatprep.mubr.msk.f32.mxu1 %vm2530_vm1, %v2529_v32 }
 0x8ea   : > { %2303 = vmatmul.mubr.msk.f32.vlgmr.msra.gmra.mrb[16].mxu0 %vm200_vm2, %v1289_v35 }
 0x8eb   : > { %2312 = vmatprep.mubr.msk.f32.mxu0 %vm2530_vm1, %v2529_v32 }
 0x9b5   : > { %v1130_v36 = vpop.f32.mrb[10].mxu1 }
 0x9b6   : > { %v2289_v37 = vpop.f32.mrb[11].mxu1 }
 0x9b9   : > { %v1206_v39 = vpop.f32.mrb[14].mxu0  ;;  %v1284_v40 = vpop.f32.mrb[12].mxu1 }
 0x9ba   : > { %v2411_v41 = vpack.i.bf16 %v1206_v39, %v1130_v36  ;;  %v1366_v43 = vmul.f32 0.35355338, %v1284_v40  ;;  %v2294_v44 = vpop.f32.mrb[15].mxu0  ;;  %v2299_v45 = vpop.f32.mrb[13].mxu1 }
 0x9bc   : > { %v1368_v46 = vadd.f32 %v2666_v14, %v1366_v43 }
 0x9bd   : > { %v1362_v47 = vpop.f32.mrb[16].mxu0 }
 0x9be   : > { %v1367_v48 = vmul.f32 0.35355338, %v1362_v47  ;;  %v2304_v49 = vpop.f32.mrb[17].mxu0  ;;  %v1370_v50 = vsel %vm200_vm2, %v1368_v46, -inf }
 0x9bf   : > { %1371 = vmax.xlane.f32.xlu0 %v1370_v50 }
 0x9c0   : > { %v1369_v51 = vadd.f32 %v2671_v15, %v1367_v48 }
 0x9c2   : > { %v1373_v52 = vsel %vm200_vm2, %v1369_v51, -inf }
 0x9c3   : > { %1374 = vmax.xlane.f32.xlu1 %v1373_v52 }
 0x9d4   : > { %1392 = vrot.lane.b32.xlu1 %v2725_v38, %s2541_s21 }
 0x9d8   : > { %2407 = vrot.lane.b32.xlu1 %v2406_v60, %s2542_s1 }
 0x9dc   : > { %2412 = vrot.lane.b32.xlu1 %v2411_v41, %s2543_s23  ;;  %s1787_s23 = scalar_lea.vmem %s2973_s12, %s2174_s0 }
 0xa4c   : > { %v1372_v53 = vpop.xlane.xlu0 %1371 }
 0xa4d   : > { %v1376_v54 = vsub.f32 %v1368_v46, %v1372_v53 }
 0xa4f   : > { %v1378_v55 = vmul.f32 1.442695, %v1376_v54  ;;  %v2425_v54 = vld [vmem:[%s2712_s30] sm:$0xff]  }
 0xa50   : > { %v1375_v57 = vpop.xlane.xlu1 %1374 }
 0xa51   : > { %2455 = vpow2.f32 %v1378_v55  ;;  %v1377_v59 = vsub.f32 %v1369_v51, %v1375_v57  ;;  %v2426_v55 = vld [vmem:[%s2712_s30 + $0x8] sm:$0xff]  }
 0xa53   : > { %v1380_v61 = vmul.f32 1.442695, %v1377_v59 }
 0xa54   : > { %v1393_v62 = vpop.permute.xlu1 %1392 }
 0xa55   : > { %2457 = vpow2.f32 %v1380_v61  ;;  %2306 = vmatpush3.msra.mxu1 %v1393_v62 }
 0xa56   : > { %2315 = vmatprep.subr.bf16.mxu1 %v2529_v32 }
 0xa58   : > { %v2408_v12 = vpop.permute.xlu1 %2407 }
 0xa59   : > { %v2410_v18 = vunpack.i.h.bf16 %v2408_v12  ;;  %v2409_v19 = vunpack.i.l.bf16 %v2408_v12 }
 0xa5b   : > { %v2456_v38 = vpop.eup %2455  ;;  %v1569_v23 = vsel %vm200_vm2, %v2775_v17, %v2410_v18  ;;  %v1568_v24 = vsel %vm200_vm2, %v2773_v13, %v2409_v19  ;;  %v2142_v17 = vld [vmem:[%s1583_s25] ss:$0 sm:$0xff] }
 0xa5c   : > { %v1382_v63 = vsel %vm200_vm2, %v2456_v38, 0.0  ;;  %v2413_v16 = vpop.permute.xlu1 %2412 }
 0xa5d   : > { %1383 = vadd.xlane.f32.xlu0 %v1382_v63  ;;  %v2415_v20 = vunpack.i.h.bf16 %v2413_v16  ;;  %v2414_v21 = vunpack.i.l.bf16 %v2413_v16 }
 0xa5f   : > { %v2458_v56 = vpop.eup %2457  ;;  %v1571_v27 = vsel %vm1570_vm3, %v1568_v24, %v2414_v21  ;;  %v1572_v29 = vsel %vm1570_vm3, %v1569_v23, %v2415_v20 }
 0xa60   : > { %v1385_v58 = vsel %vm200_vm2, %v2458_v56, 0.0 }
 0xa61   : > { %1386 = vadd.xlane.f32.xlu0 %v1385_v58  ;;  %v2146_v58 = vld [vmem:[%s1649_s27] ss:$0 sm:$0xff] }
 0xa77   : > { %1468 = vrot.lane.b32.xlu0 %v2728_v42, %s2541_s21  ;;  %v2423_v42 = vld [vmem:[%s2707_s28] sm:$0xff]   ;;  %s1877_s21 = scalar_lea.vmem %s2976_s15, %s2527_s22  ;;  %s122_s22 = sadd.s32 1, %s2527_s22  }
 0xa78   : > { %p119_p0 = scmp.ge.s32.totalorder %s122_s22, 2  }
 0xa79   :  { %vm2546_vm6 = vmmov (%p119_p0), 0   ;;  %vm1939_vm7 = vcmask (%p119_p0), 1041409   ;;  %s2547_s13 = smov (%p119_p0), [#allocation2]  }
 0xa7a   :  { %s2072_s14 = sshll.u32 (%p119_p0), %s2547_s13, 4  ;;  %s2073_s14 = int_to_ptr.vmem [resolvable:$true] %s2072_s14 }
 0xa7b   :  { %s2481_s15 = scalar_lea.vmem (%p119_p0), %s2073_s14, 32  ;;  %p2486_p2 = scmp.lt.s32.totalorder (%p119_p0), %s2073_s14, %s2073_s14 }
 0xa7c   :  { %p2482_p1 = scmp.ne.s32.totalorder (%p119_p0), %s2073_s14, %s2481_s15  ;;  %p2487_p3 = scmp.lt.s32.totalorder (%p119_p0), %s2481_s15, %s2481_s15 }
 0xa7e   :  { %p2488_p4 = por (%p119_p0), %p2487_p3, %p2486_p2 }
 0xa80   :  { %p2489_p5 = pnand (%p119_p0), %p2488_p4, %p2482_p1 }
 0xaea   : > { %v1384_v60 = vpop.xlane.xlu0 %1383 }
 0xaeb   : > { %2459 = vrcp.f32 %v1384_v60 }
 0xaee   : > { %v1387_v0 = vpop.xlane.xlu0 %1386 }
 0xaef   : > { %2461 = vrcp.f32 %v1387_v0 }
 0xaf2   : > { %v1469_v1 = vpop.permute.xlu0 %1468 }
 0xaf3   : > { %2311 = vmatpush3.msra.mxu0 %v1469_v1 }
 0xaf4   : > { %2323 = vmatprep.subr.bf16.mxu0 %v2529_v32 }
 0xaf5   : > { %v2460_v2 = vpop.eup %2459 }
 0xaf6   : > { %v1390_v3 = vmul.f32 %v2460_v2, %v2456_v38 }
 0xaf8   : > { %2308 = vmatmul.mubr.msk.f32.vlgmr.msra.gmra.mrb[14].mxu1 %vm200_vm2, %v1390_v3  ;;  %v2147_v3 = vld [vmem:[%s1651_s29] ss:$0 sm:$0xff] }
 0xaf9   : > { %v2462_v4 = vpop.eup %2461  ;;  %2319 = vmatprep.mubr.msk.bf16.mxu1 %vm2530_vm1, %v2529_v32  ;;  %2316 = vmatpush3.bf16.msra.mxu1 %v2423_v42 }
 0xafa   : > { %v1391_v5 = vmul.f32 %v2462_v4, %v2458_v56  ;;  %2317 = vmatprep.subr.bf16.mxu1 %v2529_v32 }
 0xafc   : > { %2313 = vmatmul.mubr.msk.f32.vlgmr.msra.gmra.mrb[18].mxu0 %vm200_vm2, %v1391_v5 }
 0xafd   : > { %2327 = vmatprep.mubr.msk.bf16.mxu0 %vm2530_vm1, %v2529_v32  ;;  %2318 = vmatpush3.bf16.msra.mxu1 %v2424_v6 }
 0xafe   : > { %2331 = vmatprep.subr.bf16.mxu1 %v2529_v32  ;;  %2324 = vmatpush3.bf16.msra.mxu0 %v2425_v54 }
 0xaff   : > { %2325 = vmatprep.subr.bf16.mxu0 %v2529_v32 }
 0xb02   : > { %2326 = vmatpush3.bf16.msra.mxu0 %v2426_v55 }
 0xbcb   : > { %v1464_v7 = vpop.f32.mrb[14].mxu1 }
 0xbcc   : > { %v2309_v8 = vpop.f32.mrb[15].mxu1 }
 0xbcd   : > { %v2428_v8 = vld [vmem:[%s1787_s23 + $0x8] sm:$0xff]  }
 0xbcf   : > { %v1540_v9 = vpop.f32.mrb[18].mxu0 }
 0xbd0   : > { %v2416_v10 = vpack.i.bf16 %v1540_v9, %v1464_v7  ;;  %v2314_v11 = vpop.f32.mrb[19].mxu0  ;;  %v2427_v7 = vld [vmem:[%s1787_s23] sm:$0xff]   ;;  %v2429_v9 = vld [vmem:[%s1787_s23 + $0x10] sm:$0xff]  }
 0xbd1   : > { %v2149_v11 = vld [vmem:[%s1702_s2] ss:$0 sm:$0xff] }
 0xbd2   : > { %2417 = vrot.lane.b32.xlu0 %v2416_v10, %s2544_s24  ;;  %v2430_v10 = vld [vmem:[%s1787_s23 + $0x18] sm:$0xff]  }
 0xc44   : > { %v2418_v22 = vpop.permute.xlu0 %2417 }
 0xc45   : > { %v2420_v25 = vunpack.i.h.bf16 %v2418_v22  ;;  %v2419_v26 = vunpack.i.l.bf16 %v2418_v22 }
 0xc47   : > { %v1575_v30 = vsel %vm1573_vm4, %v1572_v29, %v2420_v25  ;;  %v1574_v33 = vsel %vm1573_vm4, %v1571_v27, %v2419_v26 }
 0xc48   : > { %v1576_v34 = vpack.c.bf16 %v1575_v30, %v1574_v33 }
 0xc4a   : > { %2320 = vmatmul.mubr.msk.bf16.vlgmr.msra.gmra.mrb[16].mxu1 %vm71_vm0, %v1576_v34 }
 0xc4b   : > { %2339 = vmatprep.mubr.msk.bf16.mxu1 %vm2530_vm1, %v2529_v32  ;;  %2332 = vmatpush3.bf16.msra.mxu1 %v2427_v7 }
 0xc4c   : > { %2333 = vmatprep.subr.bf16.mxu1 %v2529_v32 }
 0xc4f   : > { %2334 = vmatpush3.bf16.msra.mxu1 %v2428_v8 }
 0xc50   : > { %2335 = vmatprep.subr.bf16.mxu1 %v2529_v32 }
 0xc53   : > { %2336 = vmatpush3.bf16.msra.mxu1 %v2429_v9 }
 0xc54   : > { %2337 = vmatprep.subr.bf16.mxu1 %v2529_v32 }
 0xc57   : > { %2338 = vmatpush3.bf16.msra.mxu1 %v2430_v10 }
 0xd1d   : > { %v1640_v35 = vpop.f32.mrb[16].mxu1 }
 0xd1e   : > { %v1641_v36 = vadd.f32 %v2142_v17, %v1640_v35  ;;  %v2321_v13 = vpop.f32.mrb[17].mxu1 }
 0xd1f   : > { %v1643_v37 = vpop.f32.mrb[18].mxu1 }
 0xd20   : > { %v1644_v39 = vadd.f32 %v2142_v17, %v1643_v37  ;;  %v2322_v40 = vpop.f32.mrb[19].mxu1  ;;  %v1647_v41 = vadd.f32 %v2523_v28, %v1641_v36 }
 0xd22   : > { %v1653_v43 = vsel %vm71_vm0, %v1647_v41, 0.0  ;;  %v1648_v44 = vadd.f32 %v2519_v31, %v1644_v39 }
 0xd23   : > { %1654 = vadd.xlane.f32.xlu1 %v1653_v43  ;;  %v2155_v43 = vld [vmem:[%s1796_s26] ss:$0 sm:$0xff] }
 0xd24   : > { %v1656_v45 = vsel %vm71_vm0, %v1648_v44, 0.0 }
 0xd25   : > { %1657 = vadd.xlane.f32.xlu0 %v1656_v45 }
 0xdb0   : > { %v1655_v46 = vpop.xlane.xlu1 %1654 }
 0xdb1   : > { %v1659_v47 = vmul.f32 0.03125, %v1655_v46 }
 0xdb2   : > { %v1658_v48 = vpop.xlane.xlu0 %1657 }
 0xdb3   : > { %v1661_v49 = vsub.f32 %v1647_v41, %v1659_v47  ;;  %v1660_v50 = vmul.f32 0.03125, %v1658_v48 }
 0xdb5   : > { %v1662_v51 = vsub.f32 %v1648_v44, %v1660_v50  ;;  %v1663_v52 = vmul.f32 %v1661_v49, %v1661_v49 }
 0xdb7   : > { %v1665_v53 = vsel %vm71_vm0, %v1663_v52, 0.0  ;;  %v1664_v28 = vmul.f32 %v1662_v51, %v1662_v51 }
 0xdb8   : > { %1666 = vadd.xlane.f32.xlu0 %v1665_v53 }
 0xdb9   : > { %v1668_v31 = vsel %vm71_vm0, %v1664_v28, 0.0 }
 0xdba   : > { %1669 = vadd.xlane.f32.xlu1 %v1668_v31 }
 0xe45   : > { %v1667_v57 = vpop.xlane.xlu0 %1666 }
 0xe46   : > { %v1671_v59 = vmul.f32 0.03125, %v1667_v57 }
 0xe47   : > { %v1670_v61 = vpop.xlane.xlu1 %1669 }
 0xe48   : > { %v1673_v62 = vadd.f32 1e-12, %v1671_v59  ;;  %v1672_v38 = vmul.f32 0.03125, %v1670_v61 }
 0xe4a   : > { %2463 = vrsqrt.f32 %v1673_v62  ;;  %v1674_v63 = vadd.f32 1e-12, %v1672_v38 }
 0xe4c   : > { %2465 = vrsqrt.f32 %v1674_v63 }
 0xe54   : > { %v2464_v56 = vpop.eup %2463 }
 0xe55   : > { %v1677_v60 = vmul.f32 %v2464_v56, %v1661_v49 }
 0xe56   : > { %v2466_v0 = vpop.eup %2465 }
 0xe57   : > { %v1678_v1 = vmul.f32 %v2466_v0, %v1662_v51  ;;  %v1685_v2 = vmul.f32 %v2146_v58, %v1677_v60 }
 0xe59   : > { %v1686_v4 = vmul.f32 %v2146_v58, %v1678_v1  ;;  %v1693_v5 = vadd.f32 %v2147_v3, %v1685_v2 }
 0xe5b   : > { %v1694_v42 = vadd.f32 %v2147_v3, %v1686_v4  ;;  %v2161_v4 = vld [vmem:[%s1875_s4] ss:$0 sm:$0xff] }
 0xe5d   : > { %v1695_v6 = vpack.c.bf16 %v1694_v42, %v1693_v5 }
 0xe5f   : > { %2328 = vmatmul.mubr.msk.bf16.vlgmr.msra.gmra.mrb[20].mxu0 %vm71_vm0, %v1695_v6  ;;  %v2162_v6 = vld [vmem:[%s1877_s21] ss:$0 sm:$0xff] }
 0xf32   : > { %v1759_v12 = vpop.f32.mrb[20].mxu0 }
 0xf33   : > { %v1760_v16 = vadd.f32 %v2149_v11, %v1759_v12  ;;  %v2329_v18 = vpop.f32.mrb[21].mxu0  ;;  %v2475_v12 = vld [vmem:[%s2977_s16] sm:$0xff] (%p119_p0)  }
 0xf34   : > { %v1762_v19 = vpop.f32.mrb[22].mxu0 }
 0xf35   : > { %v1768_v20 = vmul.f32 0.044715, %v1760_v16  ;;  %v1763_v21 = vadd.f32 %v2149_v11, %v1762_v19  ;;  %v2330_v22 = vpop.f32.mrb[23].mxu0  ;;  %v1766_v36 = vmul.f32 0.5, %v1760_v16  ;;  %v2545_v19 = vmov (%p119_p0), 0.0  }
 0xf36   :  { %2343 = vmatprep.subr.bf16.mxu0 (%p119_p0), %v2545_v19  ;;  %2351 = vmatprep.subr.bf16.mxu1 (%p119_p0), %v2545_v19 }
 0xf37   : > { %v1770_v23 = vmul.f32 %v1768_v20, %v1760_v16  ;;  %v1769_v24 = vmul.f32 0.044715, %v1763_v21  ;;  %v1767_v13 = vmul.f32 0.5, %v1763_v21  ;;  %2344 = vmatpush3.bf16.msra.mxu0 (%p119_p0), %v2475_v12  ;;  %v2476_v20 = vld [vmem:[%s2977_s16 + $0x8] sm:$0xff] (%p119_p0)   ;;  %2347 = vmatprep.mubr.msk.bf16.mxu0 (%p119_p0), %vm2546_vm6, %v2545_v19 }
 0xf38   :  { %2345 = vmatprep.subr.bf16.mxu0 (%p119_p0), %v2545_v19 }
 0xf39   : > { %v1772_v25 = vmul.f32 %v1770_v23, %v1760_v16  ;;  %v1771_v26 = vmul.f32 %v1769_v24, %v1763_v21  ;;  %v2477_v24 = vld [vmem:[%s2979_s18] sm:$0xff] (%p119_p0)  }
 0xf3b   : > { %v1774_v27 = vadd.f32 %v1772_v25, %v1760_v16  ;;  %v1773_v29 = vmul.f32 %v1771_v26, %v1763_v21  ;;  %2346 = vmatpush3.bf16.msra.mxu0 (%p119_p0), %v2476_v20  ;;  %v2478_v25 = vld [vmem:[%s2979_s18 + $0x8] sm:$0xff] (%p119_p0)   ;;  %v2163_v26 = vld [vmem:[%s2978_s17] ss:$0 sm:$0xff] (%p119_p0) }
 0xf3d   : > { %v1776_v32 = vmul.f32 0.7978846, %v1774_v27  ;;  %v1775_v30 = vadd.f32 %v1773_v29, %v1763_v21 }
 0xf3f   : > { %2467 = vtanh.f32 %v1776_v32  ;;  %v1777_v33 = vmul.f32 0.7978846, %v1775_v30 }
 0xf41   : > { %2469 = vtanh.f32 %v1777_v33 }
 0xf49   : > { %v2468_v34 = vpop.eup %2467 }
 0xf4a   : > { %v1780_v17 = vadd.f32 1.0, %v2468_v34 }
 0xf4b   : > { %v2470_v35 = vpop.eup %2469 }
 0xf4c   : > { %v1781_v37 = vadd.f32 1.0, %v2470_v35  ;;  %v1782_v39 = vmul.f32 %v1780_v17, %v1766_v36  ;;  %v2167_v35 = vld [vmem:[%s2980_s19] ss:$0 sm:$0xff] (%p119_p0) }
 0xf4e   : > { %v1783_v40 = vmul.f32 %v1781_v37, %v1767_v13 }
 0xf50   : > { %v1784_v41 = vpack.c.bf16 %v1783_v40, %v1782_v39 }
 0xf52   : > { %2340 = vmatmul.mubr.msk.bf16.vlgmr.msra.gmra.mrb[20].mxu1 %vm1828_vm5, %v1784_v41 }
 0xf53   :  { %2355 = vmatprep.mubr.msk.bf16.mxu1 (%p119_p0), %vm2546_vm6, %v2545_v19  ;;  %2352 = vmatpush3.bf16.msra.mxu1 (%p119_p0), %v2477_v24 }
 0xf54   :  { %2353 = vmatprep.subr.bf16.mxu1 (%p119_p0), %v2545_v19 }
 0xf57   :  { %2354 = vmatpush3.bf16.msra.mxu1 (%p119_p0), %v2478_v25 }
0x1025   : > { %v1866_v44 = vpop.f32.mrb[20].mxu1 }
0x1026   : > { %v1867_v45 = vadd.f32 %v2155_v43, %v1866_v44  ;;  %v2341_v46 = vpop.f32.mrb[21].mxu1 }
0x1027   : > { %v1869_v47 = vpop.f32.mrb[22].mxu1 }
0x1028   : > { %v1870_v48 = vadd.f32 %v2155_v43, %v1869_v47  ;;  %v2342_v49 = vpop.f32.mrb[23].mxu1  ;;  %v1873_v50 = vadd.f32 %v1867_v45, %v1693_v5 }
0x102a   : > { %v1879_v51 = vsel %vm71_vm0, %v1873_v50, 0.0  ;;  %v1874_v52 = vadd.f32 %v1870_v48, %v1694_v42 }
0x102b   : > { %1880 = vadd.xlane.f32.xlu0 %v1879_v51 }
0x102c   : > { %v1882_v53 = vsel %vm71_vm0, %v1874_v52, 0.0 }
0x102d   : > { %1883 = vadd.xlane.f32.xlu1 %v1882_v53 }
0x10b8   : > { %v1881_v28 = vpop.xlane.xlu0 %1880 }
0x10b9   : > { %v1885_v31 = vmul.f32 0.03125, %v1881_v28 }
0x10ba   : > { %v1884_v54 = vpop.xlane.xlu1 %1883 }
0x10bb   : > { %v1887_v55 = vsub.f32 %v1873_v50, %v1885_v31  ;;  %v1886_v57 = vmul.f32 0.03125, %v1884_v54 }
0x10bd   : > { %v1888_v59 = vsub.f32 %v1874_v52, %v1886_v57  ;;  %v1889_v61 = vmul.f32 %v1887_v55, %v1887_v55 }
0x10bf   : > { %v1891_v62 = vsel %vm71_vm0, %v1889_v61, 0.0  ;;  %v1890_v38 = vmul.f32 %v1888_v59, %v1888_v59 }
0x10c0   : > { %1892 = vadd.xlane.f32.xlu0 %v1891_v62 }
0x10c1   : > { %v1894_v63 = vsel %vm71_vm0, %v1890_v38, 0.0 }
0x10c2   : > { %1895 = vadd.xlane.f32.xlu1 %v1894_v63 }
0x114d   : > { %v1893_v56 = vpop.xlane.xlu0 %1892 }
0x114e   : > { %v1897_v58 = vmul.f32 0.03125, %v1893_v56 }
0x114f   : > { %v1896_v60 = vpop.xlane.xlu1 %1895 }
0x1150   : > { %v1899_v0 = vadd.f32 1e-12, %v1897_v58  ;;  %v1898_v1 = vmul.f32 0.03125, %v1896_v60 }
0x1152   : > { %2471 = vrsqrt.f32 %v1899_v0  ;;  %v1900_v2 = vadd.f32 1e-12, %v1898_v1 }
0x1154   : > { %2473 = vrsqrt.f32 %v1900_v2 }
0x115c   : > { %v2472_v3 = vpop.eup %2471 }
0x115d   : > { %v1903_v5 = vmul.f32 %v2472_v3, %v1887_v55 }
0x115e   : > { %v2474_v42 = vpop.eup %2473 }
0x115f   : > { %v1911_v7 = vmul.f32 %v2161_v4, %v1903_v5  ;;  %v1904_v8 = vmul.f32 %v2474_v42, %v1888_v59  ;;  %121 = sbr.rel (!%p119_p0) target bundleno = 329 (0x149), region = 119 }
0x1161   : > { %v1919_v9 = vadd.f32 %v2162_v6, %v1911_v7   ;;  %v1912_v10 = vmul.f32 %v2161_v4, %v1904_v8 }
0x1163   : > { %v1920_v11 = vadd.f32 %v2162_v6, %v1912_v10   ;;  %v2995_v28 = vmov %v1919_v9  ;;  %v1921_v16 = vpack.c.bf16 (%p119_p0), %v1919_v9, %v1919_v9 }
0x1165   : > { %v2994_v31 = vmov %v1920_v11  ;;  %v1922_v18 = vpack.c.bf16 (%p119_p0), %v1920_v11, %v1920_v11  ;;  %v1936_v21 = vunpack.c.l.b16 (%p119_p0), %v1921_v16 }
0x1167   :  { %v1937_v22 = vunpack.c.l.b16 %v1922_v18 }
0x1169   :  { %v1938_v14 = vrot.slane %v1937_v22, 7 }
0x116b   :  { %v1940_v15 = vsel %vm1939_vm7, %v1938_v14, %v1936_v21 }
0x116c   :  { %v1941_v23 = vpack.c.b16 %v1940_v15, %v1940_v15 }
0x116e   :  { %2348 = vmatmul.mubr.msk.bf16.vlgmr.msra.gmra.mrb[0].mxu0 %vm71_vm0, %v1941_v23 }
0x1241   :  { %v1991_v27 = vpop.f32.mrb[0].mxu0 }
0x1242   :  { %v1992_v29 = vadd.f32 %v2163_v26, %v1991_v27  ;;  %v2349_v32 = vpop.f32.mrb[1].mxu0 }
0x1243   :  { %v1994_v30 = vpop.f32.mrb[2].mxu0 }
0x1244   :  { %2479 = vtanh.f32 %v1992_v29  ;;  %v2350_v33 = vpop.f32.mrb[3].mxu0 }
0x124e   :  { %v2480_v34 = vpop.eup %2479 }
0x124f   :  { %v1998_v17 = vpack.c.bf16 %v2480_v34, %v2480_v34 }
0x1251   :  { %2356 = vmatmul.mubr.msk.bf16.vlgmr.msra.gmra.mrb[0].mxu1 %vm71_vm0, %v1998_v17 }
0x1324   :  { %v2059_v36 = vpop.f32.mrb[0].mxu1 }
0x1325   :  { %v2060_v13 = vadd.f32 %v2167_v35, %v2059_v36  ;;  %v2357_v37 = vpop.f32.mrb[1].mxu1 }
0x1326   :  { %v2062_v39 = vpop.f32.mrb[2].mxu1 }
0x1327   :  { %2065 = vst [vmem:[#allocation2] sm:$0x3] %v2060_v13  ;;  %v2358_v40 = vpop.f32.mrb[3].mxu1 }
0x1328   :  { %2492 = shalt.err (!%p2489_p5)
}
0x1329   :  { %s2493_s18 = scalar_lea.hbm %s2981_s20, 32 }
0x132a   :  { %p2494_p6 = scmp.ne.s32.totalorder %s2981_s20, %s2493_s18  ;;  %p2497_p7 = scmp.lt.u32.totalorder %s2493_s18, %s2981_s20 }
0x132c   :  { %p2499_p8 = pnand %p2497_p7, %p2494_p6 }
0x132e   :  { %2502 = shalt.err (!%p2499_p8)
}
0x132f   :  { %2075 = dma.vmem_to_hbm [thread:$0]  %s2073_s14, 32, %s2981_s20, [#allocation3]  }
0x1330   :  { %2515 = dma.done.wait [#allocation3], 32  }
0x1331   :  { %2516 = vsyncadd [#allocation3], 4294967264 }
0x1332   :  { %2079 = vsyncpa [#allocation3], 1 }

</bundles_post_ra>
